<compile_context>
chip_gen: v5e
topology: v5e:2x2
jax: 0.10.0
libtpu: 0.0.40
codegen_flags: <defaults>
</compile_context>

<pallas_src>
from functools import partial

import jax
import jax.numpy as jnp
from jax.experimental import pallas as pl
from jax.experimental.pallas import tpu as pltpu

_VMEM_LIMIT = 32 * 1024 * 1024  # safe on v5e/v6e (128 MiB) and v7x (64 MiB)
_TM_MAX = 512                   # rows of the im2col matrix per grid step
_KW = 4                         # kernel size of every conv in this module


def _round_up(x, m):
    return (x + m - 1) // m * m


# ---------------------------------------------------------------------------
# Pallas kernels
# ---------------------------------------------------------------------------
def _conv_act_kernel(p_ref, w_ref, b_ref, o_ref, *, act):
    """matmul (bf16 in, f32 acc) + bias + activation for one M-tile."""
    y = jnp.dot(p_ref[...], w_ref[...], preferred_element_type=jnp.float32)
    y = y + b_ref[...]
    if act == "leaky":
        y = jnp.where(y >= 0.0, y, 0.2 * y)
    elif act == "sigmoid":
        # exp + reciprocal both go to the EUP slot (cheap).
        y = pl.reciprocal(1.0 + jnp.exp(-y), approx=True)
    # act == "none": identity
    o_ref[...] = y


def _conv_stats_kernel(p_ref, w_ref, b_ref, y_ref, stats_ref, *, m_true, tm):
    """Pass 1 of BN layers: matmul + bias, write y tile, accumulate
    per-channel sum / sum-of-squares (padded rows masked out)."""
    i = pl.program_id(0)

    @pl.when(i == 0)
    def _():
        stats_ref[...] = jnp.zeros_like(stats_ref)

    y = jnp.dot(p_ref[...], w_ref[...], preferred_element_type=jnp.float32)
    y = y + b_ref[...]
    y_ref[...] = y

    rows = i * tm + jax.lax.broadcasted_iota(jnp.int32, y.shape, 0)
    ym = jnp.where(rows < m_true, y, 0.0)
    s1 = jnp.sum(ym, axis=0, keepdims=True)
    s2 = jnp.sum(ym * ym, axis=0, keepdims=True)
    stats_ref[...] = stats_ref[...] + jnp.concatenate([s1, s2], axis=0)


def _bn_act_kernel(y_ref, stats_ref, gb_ref, o_ref, *, m_true):
    """Pass 2 of BN layers: (y-mean)*rsqrt(var+eps)*gamma+beta + LeakyReLU."""
    inv_m = 1.0 / m_true  # compile-time constant
    mean = stats_ref[0:1, :] * inv_m
    var = jnp.maximum(stats_ref[1:2, :] * inv_m - mean * mean, 0.0)  # biased
    scale = jax.lax.rsqrt(var + 1e-5) * gb_ref[0:1, :]
    shift = gb_ref[1:2, :] - mean * scale
    y = y_ref[...] * scale + shift
    o_ref[...] = jnp.where(y >= 0.0, y, 0.2 * y)


# ---------------------------------------------------------------------------
# im2col glue (plain JAX, NHWC, emitted in bf16)
# K column order is (kh, kw, Cin) to match the prepared weight layout.
# ---------------------------------------------------------------------------
# TODO(synk): fuse patch extraction into the kernel (strided row-slab DMA per
# M-tile) to avoid the kh*kw duplication of activation traffic in HBM.
def _im2col_nhwc(x, k, stride, pad):
    N, H, W, C = x.shape
    xp = jnp.pad(x, ((0, 0), (pad, pad), (pad, pad), (0, 0)))
    OH = (H + 2 * pad - k) // stride + 1
    OW = (W + 2 * pad - k) // stride + 1
    cols = []
    for i in range(k):
        for j in range(k):
            cols.append(xp[:, i:i + stride * OH:stride,
                           j:j + stride * OW:stride, :])
    patches = jnp.stack(cols, axis=3)                 # (N, OH, OW, k*k, C)
    patches = patches.reshape(N * OH * OW, k * k * C)
    return patches, OH, OW


# ---------------------------------------------------------------------------
# One conv layer (input/output NHWC).  `k`, `stride`, `pad` are static ints.
# ---------------------------------------------------------------------------
def conv_layer(x, layer, *, k, stride, pad, use_bn, act):
    wf = layer["w"]            # (K, Cout) bf16, prepared once
    b = layer["b"]             # (1, Cout) f32
    gb = layer["gb"]           # (2, Cout) f32 (gamma, beta) or None
    K, Cout = wf.shape
    N = x.shape[0]

    patches, OH, OW = _im2col_nhwc(x.astype(jnp.bfloat16), k, stride, pad)
    M = patches.shape[0]

    TM = min(_TM_MAX, _round_up(M, 16))   # multiple of 16 -> bf16 sublane ok
    Mp = _round_up(M, TM)
    if Mp != M:
        patches = jnp.pad(patches, ((0, Mp - M), (0, 0)))
    nm = Mp // TM

    par = pltpu.CompilerParams(dimension_semantics=("parallel",),
                               vmem_limit_bytes=_VMEM_LIMIT)
    arb = pltpu.CompilerParams(dimension_semantics=("arbitrary",),
                               vmem_limit_bytes=_VMEM_LIMIT)

    p_spec = pl.BlockSpec((TM, K), lambda i: (i, 0))
    w_spec = pl.BlockSpec((K, Cout), lambda i: (0, 0))
    b_spec = pl.BlockSpec((1, Cout), lambda i: (0, 0))
    y_spec = pl.BlockSpec((TM, Cout), lambda i: (i, 0))

    if not use_bn:
        out = pl.pallas_call(
            partial(_conv_act_kernel, act=act),
            out_shape=jax.ShapeDtypeStruct((Mp, Cout), jnp.float32),
            grid=(nm,),
            in_specs=[p_spec, w_spec, b_spec],
            out_specs=y_spec,
            compiler_params=par,
        )(patches, wf, b)
    else:
        # Pass 1: matmul + bias, accumulate per-channel stats across M.
        y_pad, stats = pl.pallas_call(
            partial(_conv_stats_kernel, m_true=M, tm=TM),
            out_shape=(jax.ShapeDtypeStruct((Mp, Cout), jnp.float32),
                       jax.ShapeDtypeStruct((2, Cout), jnp.float32)),
            grid=(nm,),
            in_specs=[p_spec, w_spec, b_spec],
            out_specs=(y_spec, pl.BlockSpec((2, Cout), lambda i: (0, 0))),
            compiler_params=arb,
        )(patches, wf, b)
        # Pass 2: normalize + LeakyReLU (cheap elementwise sweep).
        out = pl.pallas_call(
            partial(_bn_act_kernel, m_true=float(M)),
            out_shape=jax.ShapeDtypeStruct((Mp, Cout), jnp.float32),
            grid=(nm,),
            in_specs=[y_spec,
                      pl.BlockSpec((2, Cout), lambda i: (0, 0)),
                      pl.BlockSpec((2, Cout), lambda i: (0, 0))],
            out_specs=y_spec,
            compiler_params=par,
        )(y_pad, stats, gb)

    return out[:M].reshape(N, OH, OW, Cout)   # stay NHWC between layers


# ---------------------------------------------------------------------------
# Parameter init (PyTorch layout) + one-time preparation for the kernels
# ---------------------------------------------------------------------------
def init_discriminator_params(key, input_nc, ngf, n_layer=3):
    layer_dims = [(input_nc, ngf)]
    nf = ngf
    for _ in range(1, n_layer):
        nf_prev, nf = nf, min(nf * 2, 128)
        layer_dims.append((nf_prev, nf))
    layer_dims.append((nf, 1))  # final conv to 1 channel

    keys = jax.random.split(key, 2 * len(layer_dims))
    params = []
    for i, (cin, cout) in enumerate(layer_dims):
        Wk = 0.05 * jax.random.normal(keys[2 * i], (cout, cin, _KW, _KW),
                                      jnp.float32)
        bk = 0.05 * jax.random.normal(keys[2 * i + 1], (cout,), jnp.float32)
        params.append((Wk, bk))
    return params


def prepare_params(params, n_layer=3):
    """Hoist weight flattening / transpose / bf16 cast out of the forward.

    NOTE: no static metadata (like the kernel size) goes into this pytree —
    it is passed through jax.jit, so every leaf becomes a traced array.
    """
    prepped = []
    for idx, (W, b) in enumerate(params):
        Cout, Cin, kh, kw = W.shape
        # (Cout, Cin, kh, kw) -> (kh, kw, Cin, Cout) -> (K, Cout), bf16 for MXU.
        wf = jnp.transpose(W, (2, 3, 1, 0)).reshape(kh * kw * Cin, Cout)
        wf = wf.astype(jnp.bfloat16)
        bf = b.astype(jnp.float32).reshape(1, Cout)
        if 1 <= idx < n_layer:  # BN layers: gamma=1, beta=0 (PyTorch default)
            gb = jnp.concatenate(
                [jnp.ones((1, Cout), jnp.float32),
                 jnp.zeros((1, Cout), jnp.float32)], axis=0)
        else:
            gb = None
        prepped.append({"w": wf, "b": bf, "gb": gb})
    return prepped


# ---------------------------------------------------------------------------
# Forward pass (input NCHW to match the PyTorch module API)
# ---------------------------------------------------------------------------
def discriminator_forward(prepped, x, n_layer=3, use_sigmoid=True):
    x = jnp.transpose(x, (0, 2, 3, 1))   # NCHW -> NHWC once, at the boundary
    # layer 0: Conv(k=4,s=2,p=2) + LeakyReLU(0.2)
    y = conv_layer(x, prepped[0], k=_KW, stride=2, pad=2,
                   use_bn=False, act="leaky")
    # layers 1..n_layer-1: Conv + BatchNorm2d + LeakyReLU(0.2)
    for n in range(1, n_layer):
        y = conv_layer(y, prepped[n], k=_KW, stride=2, pad=2,
                       use_bn=True, act="leaky")
    # final: Conv(k=4,s=2,p=1) + Sigmoid
    y = conv_layer(y, prepped[n_layer], k=_KW, stride=2, pad=1, use_bn=False,
                   act="sigmoid" if use_sigmoid else "none")
    # final channel dim is 1, so NHWC row-major flatten == PyTorch .view(-1)
    return y.reshape(-1)


if __name__ == "__main__":
    key = jax.random.PRNGKey(0)
    k_param, k_input = jax.random.split(key)

    input_nc, ngf, n_layer = 4, 8, 3
    x = jax.random.normal(k_input, (2, input_nc, 16, 16), jnp.float32)

    params = init_discriminator_params(k_param, input_nc, ngf, n_layer)
    prepped = prepare_params(params, n_layer=n_layer)

    fwd = jax.jit(partial(discriminator_forward, n_layer=n_layer,
                          use_sigmoid=True))
    out = fwd(prepped, x)
    out = jax.block_until_ready(out)

    assert out.shape == (2,), out.shape
    assert bool(jnp.all(jnp.isfinite(out)))
    assert bool(jnp.all((out >= 0.0) & (out <= 1.0)))   # sigmoid range
    print("KERNEL_OK")
</pallas_src>

<mosaic_0001>
module attributes {stable_mosaic.version = 11 : i64} {
  func.func @_conv_act_kernel(%arg0: i32, %arg1: memref<176x64xbf16, #tpu.memory_space<vmem>>, %arg2: memref<64x8xbf16, #tpu.memory_space<vmem>>, %arg3: memref<1x8xf32, #tpu.memory_space<vmem>>, %arg4: memref<176x8xf32, #tpu.memory_space<vmem>>) attributes {dimension_semantics = [#tpu.dimension_semantics<parallel>], iteration_bounds = array<i64: 1>, scalar_prefetch = 0 : i64, scratch_operands = 0 : i64, tpu.core_type = #tpu.core_type<tc>, window_params = [{transform_indices = @transform_0, window_bounds = array<i64: 176, 64>}, {pipeline_mode = #tpu.pipeline_mode<synchronous>, transform_indices = @transform_1, window_bounds = array<i64: 64, 8>}, {pipeline_mode = #tpu.pipeline_mode<synchronous>, transform_indices = @transform_2, window_bounds = array<i64: 1, 8>}, {transform_indices = @transform_3, window_bounds = array<i64: 176, 8>}]} {
    %c0 = arith.constant 0 : index
    %c0_0 = arith.constant 0 : index
    %0 = vector.load %arg1[%c0, %c0_0] : memref<176x64xbf16, #tpu.memory_space<vmem>>, vector<176x64xbf16>
    %c0_1 = arith.constant 0 : index
    %c0_2 = arith.constant 0 : index
    %1 = vector.load %arg2[%c0_1, %c0_2] : memref<64x8xbf16, #tpu.memory_space<vmem>>, vector<64x8xbf16>
    %cst = arith.constant dense<0.000000e+00> : vector<176x8xf32>
    %2 = tpu.matmul %0, %1, %cst {dimension_numbers = #tpu.dot_dimension_numbers<[1], [0], [0], [1], [0, 0, 1, 1], [], []>} : vector<176x64xbf16>, vector<64x8xbf16>, vector<176x8xf32> -> vector<176x8xf32>
    %c0_3 = arith.constant 0 : index
    %c0_4 = arith.constant 0 : index
    %3 = vector.load %arg3[%c0_3, %c0_4] : memref<1x8xf32, #tpu.memory_space<vmem>>, vector<1x8xf32>
    %4 = vector.broadcast %3 : vector<1x8xf32> to vector<176x8xf32>
    %5 = arith.addf %2, %4 : vector<176x8xf32>
    %cst_5 = arith.constant 0.000000e+00 : f32
    %6 = vector.broadcast %cst_5 : f32 to vector<176x8xf32>
    %7 = arith.cmpf oge, %5, %6 : vector<176x8xf32>
    %cst_6 = arith.constant 2.000000e-01 : f32
    %8 = vector.broadcast %cst_6 : f32 to vector<176x8xf32>
    %9 = arith.mulf %8, %5 : vector<176x8xf32>
    %10 = arith.select %7, %5, %9 : vector<176x8xi1>, vector<176x8xf32>
    %c0_7 = arith.constant 0 : index
    %c0_8 = arith.constant 0 : index
    %11 = vector.load %arg4[%c0_7, %c0_8] : memref<176x8xf32, #tpu.memory_space<vmem>>, vector<176x8xf32>
    tpu.vector_store %arg4[%c0_7, %c0_8], %10 {strides = array<i32>} : memref<176x8xf32, #tpu.memory_space<vmem>>, vector<176x8xf32>,
    return
  }
  func.func @transform_0(%arg0: i32) -> (i32, i32) {
    %c0_i32 = arith.constant 0 : i32
    %c0_i32_0 = arith.constant 0 : i32
    return %arg0, %c0_i32 : i32, i32
  }
  func.func @transform_1(%arg0: i32) -> (i32, i32) {
    %c0_i32 = arith.constant 0 : i32
    %c0_i32_0 = arith.constant 0 : i32
    %c0_i32_1 = arith.constant 0 : i32
    return %c0_i32, %c0_i32_0 : i32, i32
  }
  func.func @transform_2(%arg0: i32) -> (i32, i32) {
    %c0_i32 = arith.constant 0 : i32
    %c0_i32_0 = arith.constant 0 : i32
    %c0_i32_1 = arith.constant 0 : i32
    return %c0_i32, %c0_i32_0 : i32, i32
  }
  func.func @transform_3(%arg0: i32) -> (i32, i32) {
    %c0_i32 = arith.constant 0 : i32
    %c0_i32_0 = arith.constant 0 : i32
    return %arg0, %c0_i32 : i32, i32
  }
}

module attributes {stable_mosaic.version = 11 : i64} {
  func.func @_conv_stats_kernel(%arg0: i32, %arg1: memref<64x128xbf16, #tpu.memory_space<vmem>>, %arg2: memref<128x16xbf16, #tpu.memory_space<vmem>>, %arg3: memref<1x16xf32, #tpu.memory_space<vmem>>, %arg4: memref<64x16xf32, #tpu.memory_space<vmem>>, %arg5: memref<2x16xf32, #tpu.memory_space<vmem>>) attributes {dimension_semantics = [#tpu.dimension_semantics<arbitrary>], iteration_bounds = array<i64: 1>, scalar_prefetch = 0 : i64, scratch_operands = 0 : i64, tpu.core_type = #tpu.core_type<tc>, window_params = [{transform_indices = @transform_0, window_bounds = array<i64: 64, 128>}, {pipeline_mode = #tpu.pipeline_mode<synchronous>, transform_indices = @transform_1, window_bounds = array<i64: 128, 16>}, {pipeline_mode = #tpu.pipeline_mode<synchronous>, transform_indices = @transform_2, window_bounds = array<i64: 1, 16>}, {transform_indices = @transform_3, window_bounds = array<i64: 64, 16>}, {pipeline_mode = #tpu.pipeline_mode<synchronous>, transform_indices = @transform_4, window_bounds = array<i64: 2, 16>}]} {
    %c0_i32 = arith.constant 0 : i32
    %0 = arith.cmpi eq, %arg0, %c0_i32 : i32
    %1 = arith.extui %0 : i1 to i32
    %c0_i32_0 = arith.constant 0 : i32
    %2 = arith.cmpi ne, %1, %c0_i32_0 : i32
    scf.if %2 {
      %cst_15 = arith.constant 0.000000e+00 : f32
      %27 = vector.broadcast %cst_15 : f32 to vector<2x16xf32>
      %c0_16 = arith.constant 0 : index
      %c0_17 = arith.constant 0 : index
      %28 = vector.load %arg5[%c0_16, %c0_17] : memref<2x16xf32, #tpu.memory_space<vmem>>, vector<2x16xf32>
      tpu.vector_store %arg5[%c0_16, %c0_17], %27 {strides = array<i32>} : memref<2x16xf32, #tpu.memory_space<vmem>>, vector<2x16xf32>,
    } else {
    }
    %c0 = arith.constant 0 : index
    %c0_1 = arith.constant 0 : index
    %3 = vector.load %arg1[%c0, %c0_1] : memref<64x128xbf16, #tpu.memory_space<vmem>>, vector<64x128xbf16>
    %c0_2 = arith.constant 0 : index
    %c0_3 = arith.constant 0 : index
    %4 = vector.load %arg2[%c0_2, %c0_3] : memref<128x16xbf16, #tpu.memory_space<vmem>>, vector<128x16xbf16>
    %cst = arith.constant dense<0.000000e+00> : vector<64x16xf32>
    %5 = tpu.matmul %3, %4, %cst {dimension_numbers = #tpu.dot_dimension_numbers<[1], [0], [0], [1], [0, 0, 1, 1], [], []>} : vector<64x128xbf16>, vector<128x16xbf16>, vector<64x16xf32> -> vector<64x16xf32>
    %c0_4 = arith.constant 0 : index
    %c0_5 = arith.constant 0 : index
    %6 = vector.load %arg3[%c0_4, %c0_5] : memref<1x16xf32, #tpu.memory_space<vmem>>, vector<1x16xf32>
    %7 = vector.broadcast %6 : vector<1x16xf32> to vector<64x16xf32>
    %8 = arith.addf %5, %7 : vector<64x16xf32>
    %c0_6 = arith.constant 0 : index
    %c0_7 = arith.constant 0 : index
    %9 = vector.load %arg4[%c0_6, %c0_7] : memref<64x16xf32, #tpu.memory_space<vmem>>, vector<64x16xf32>
    tpu.vector_store %arg4[%c0_6, %c0_7], %8 {strides = array<i32>} : memref<64x16xf32, #tpu.memory_space<vmem>>, vector<64x16xf32>,
    %c64_i32 = arith.constant 64 : i32
    %10 = arith.muli %arg0, %c64_i32 : i32
    %11 = tpu.iota {dimensions = array<i32: 0>} : vector<64x16xi32>
    %12 = vector.broadcast %10 : i32 to vector<64x16xi32>
    %13 = arith.addi %12, %11 : vector<64x16xi32>
    %c50_i32 = arith.constant 50 : i32
    %14 = vector.broadcast %c50_i32 : i32 to vector<64x16xi32>
    %15 = arith.cmpi slt, %13, %14 : vector<64x16xi32>
    %cst_8 = arith.constant 0.000000e+00 : f32
    %16 = vector.broadcast %cst_8 : f32 to vector<64x16xf32>
    %17 = arith.select %15, %8, %16 : vector<64x16xi1>, vector<64x16xf32>
    %cst_9 = arith.constant dense<0.000000e+00> : vector<16xf32>
    %18 = vector.multi_reduction <add>, %17, %cst_9 [0] : vector<64x16xf32> to vector<16xf32>
    %19 = vector.shape_cast %18 : vector<16xf32> to vector<1x16xf32>
    %20 = arith.mulf %17, %17 : vector<64x16xf32>
    %cst_10 = arith.constant dense<0.000000e+00> : vector<16xf32>
    %21 = vector.multi_reduction <add>, %20, %cst_10 [0] : vector<64x16xf32> to vector<16xf32>
    %22 = vector.shape_cast %21 : vector<16xf32> to vector<1x16xf32>
    %c0_11 = arith.constant 0 : index
    %c0_12 = arith.constant 0 : index
    %23 = vector.load %arg5[%c0_11, %c0_12] : memref<2x16xf32, #tpu.memory_space<vmem>>, vector<2x16xf32>
    %24 = tpu.concatenate %19, %22 in 0 : vector<1x16xf32>, vector<1x16xf32> -> vector<2x16xf32>
    %25 = arith.addf %23, %24 : vector<2x16xf32>
    %c0_13 = arith.constant 0 : index
    %c0_14 = arith.constant 0 : index
    %26 = vector.load %arg5[%c0_13, %c0_14] : memref<2x16xf32, #tpu.memory_space<vmem>>, vector<2x16xf32>
    tpu.vector_store %arg5[%c0_13, %c0_14], %25 {strides = array<i32>} : memref<2x16xf32, #tpu.memory_space<vmem>>, vector<2x16xf32>,
    return
  }
  func.func @transform_0(%arg0: i32) -> (i32, i32) {
    %c0_i32 = arith.constant 0 : i32
    %c0_i32_0 = arith.constant 0 : i32
    return %arg0, %c0_i32 : i32, i32
  }
  func.func @transform_1(%arg0: i32) -> (i32, i32) {
    %c0_i32 = arith.constant 0 : i32
    %c0_i32_0 = arith.constant 0 : i32
    %c0_i32_1 = arith.constant 0 : i32
    return %c0_i32, %c0_i32_0 : i32, i32
  }
  func.func @transform_2(%arg0: i32) -> (i32, i32) {
    %c0_i32 = arith.constant 0 : i32
    %c0_i32_0 = arith.constant 0 : i32
    %c0_i32_1 = arith.constant 0 : i32
    return %c0_i32, %c0_i32_0 : i32, i32
  }
  func.func @transform_3(%arg0: i32) -> (i32, i32) {
    %c0_i32 = arith.constant 0 : i32
    %c0_i32_0 = arith.constant 0 : i32
    return %arg0, %c0_i32 : i32, i32
  }
  func.func @transform_4(%arg0: i32) -> (i32, i32) {
    %c0_i32 = arith.constant 0 : i32
    %c0_i32_0 = arith.constant 0 : i32
    %c0_i32_1 = arith.constant 0 : i32
    return %c0_i32, %c0_i32_0 : i32, i32
  }
}

module attributes {stable_mosaic.version = 11 : i64} {
  func.func @_bn_act_kernel(%arg0: i32, %arg1: memref<64x16xf32, #tpu.memory_space<vmem>>, %arg2: memref<2x16xf32, #tpu.memory_space<vmem>>, %arg3: memref<2x16xf32, #tpu.memory_space<vmem>>, %arg4: memref<64x16xf32, #tpu.memory_space<vmem>>) attributes {dimension_semantics = [#tpu.dimension_semantics<parallel>], iteration_bounds = array<i64: 1>, scalar_prefetch = 0 : i64, scratch_operands = 0 : i64, tpu.core_type = #tpu.core_type<tc>, window_params = [{transform_indices = @transform_0, window_bounds = array<i64: 64, 16>}, {pipeline_mode = #tpu.pipeline_mode<synchronous>, transform_indices = @transform_1, window_bounds = array<i64: 2, 16>}, {pipeline_mode = #tpu.pipeline_mode<synchronous>, transform_indices = @transform_2, window_bounds = array<i64: 2, 16>}, {transform_indices = @transform_3, window_bounds = array<i64: 64, 16>}]} {
    %c0 = arith.constant 0 : index
    %c0_0 = arith.constant 0 : index
    %0 = vector.load %arg2[%c0, %c0_0] : memref<2x16xf32, #tpu.memory_space<vmem>>, vector<1x16xf32>
    %cst = arith.constant 2.000000e-02 : f32
    %1 = vector.broadcast %cst : f32 to vector<1x16xf32>
    %2 = arith.mulf %0, %1 : vector<1x16xf32>
    %c1 = arith.constant 1 : index
    %c0_1 = arith.constant 0 : index
    %3 = vector.load %arg2[%c1, %c0_1] : memref<2x16xf32, #tpu.memory_space<vmem>>, vector<1x16xf32>
    %cst_2 = arith.constant 2.000000e-02 : f32
    %4 = vector.broadcast %cst_2 : f32 to vector<1x16xf32>
    %5 = arith.mulf %3, %4 : vector<1x16xf32>
    %6 = arith.mulf %2, %2 : vector<1x16xf32>
    %7 = arith.subf %5, %6 : vector<1x16xf32>
    %cst_3 = arith.constant 0.000000e+00 : f32
    %8 = vector.broadcast %cst_3 : f32 to vector<1x16xf32>
    %9 = arith.maximumf %7, %8 : vector<1x16xf32>
    %cst_4 = arith.constant 9.99999974E-6 : f32
    %10 = vector.broadcast %cst_4 : f32 to vector<1x16xf32>
    %11 = arith.addf %9, %10 : vector<1x16xf32>
    %12 = math.rsqrt %11 : vector<1x16xf32>
    %c0_5 = arith.constant 0 : index
    %c0_6 = arith.constant 0 : index
    %13 = vector.load %arg3[%c0_5, %c0_6] : memref<2x16xf32, #tpu.memory_space<vmem>>, vector<1x16xf32>
    %14 = arith.mulf %12, %13 : vector<1x16xf32>
    %c1_7 = arith.constant 1 : index
    %c0_8 = arith.constant 0 : index
    %15 = vector.load %arg3[%c1_7, %c0_8] : memref<2x16xf32, #tpu.memory_space<vmem>>, vector<1x16xf32>
    %16 = arith.mulf %2, %14 : vector<1x16xf32>
    %17 = arith.subf %15, %16 : vector<1x16xf32>
    %c0_9 = arith.constant 0 : index
    %c0_10 = arith.constant 0 : index
    %18 = vector.load %arg1[%c0_9, %c0_10] : memref<64x16xf32, #tpu.memory_space<vmem>>, vector<64x16xf32>
    %19 = vector.broadcast %14 : vector<1x16xf32> to vector<64x16xf32>
    %20 = arith.mulf %18, %19 : vector<64x16xf32>
    %21 = vector.broadcast %17 : vector<1x16xf32> to vector<64x16xf32>
    %22 = arith.addf %20, %21 : vector<64x16xf32>
    %cst_11 = arith.constant 0.000000e+00 : f32
    %23 = vector.broadcast %cst_11 : f32 to vector<64x16xf32>
    %24 = arith.cmpf oge, %22, %23 : vector<64x16xf32>
    %cst_12 = arith.constant 2.000000e-01 : f32
    %25 = vector.broadcast %cst_12 : f32 to vector<64x16xf32>
    %26 = arith.mulf %25, %22 : vector<64x16xf32>
    %27 = arith.select %24, %22, %26 : vector<64x16xi1>, vector<64x16xf32>
    %c0_13 = arith.constant 0 : index
    %c0_14 = arith.constant 0 : index
    %28 = vector.load %arg4[%c0_13, %c0_14] : memref<64x16xf32, #tpu.memory_space<vmem>>, vector<64x16xf32>
    tpu.vector_store %arg4[%c0_13, %c0_14], %27 {strides = array<i32>} : memref<64x16xf32, #tpu.memory_space<vmem>>, vector<64x16xf32>,
    return
  }
  func.func @transform_0(%arg0: i32) -> (i32, i32) {
    %c0_i32 = arith.constant 0 : i32
    %c0_i32_0 = arith.constant 0 : i32
    return %arg0, %c0_i32 : i32, i32
  }
  func.func @transform_1(%arg0: i32) -> (i32, i32) {
    %c0_i32 = arith.constant 0 : i32
    %c0_i32_0 = arith.constant 0 : i32
    %c0_i32_1 = arith.constant 0 : i32
    return %c0_i32, %c0_i32_0 : i32, i32
  }
  func.func @transform_2(%arg0: i32) -> (i32, i32) {
    %c0_i32 = arith.constant 0 : i32
    %c0_i32_0 = arith.constant 0 : i32
    %c0_i32_1 = arith.constant 0 : i32
    return %c0_i32, %c0_i32_0 : i32, i32
  }
  func.func @transform_3(%arg0: i32) -> (i32, i32) {
    %c0_i32 = arith.constant 0 : i32
    %c0_i32_0 = arith.constant 0 : i32
    return %arg0, %c0_i32 : i32, i32
  }
}

module attributes {stable_mosaic.version = 11 : i64} {
  func.func @_bn_act_kernel(%arg0: i32, %arg1: memref<32x32xf32, #tpu.memory_space<vmem>>, %arg2: memref<2x32xf32, #tpu.memory_space<vmem>>, %arg3: memref<2x32xf32, #tpu.memory_space<vmem>>, %arg4: memref<32x32xf32, #tpu.memory_space<vmem>>) attributes {dimension_semantics = [#tpu.dimension_semantics<parallel>], iteration_bounds = array<i64: 1>, scalar_prefetch = 0 : i64, scratch_operands = 0 : i64, tpu.core_type = #tpu.core_type<tc>, window_params = [{transform_indices = @transform_0, window_bounds = array<i64: 32, 32>}, {pipeline_mode = #tpu.pipeline_mode<synchronous>, transform_indices = @transform_1, window_bounds = array<i64: 2, 32>}, {pipeline_mode = #tpu.pipeline_mode<synchronous>, transform_indices = @transform_2, window_bounds = array<i64: 2, 32>}, {transform_indices = @transform_3, window_bounds = array<i64: 32, 32>}]} {
    %c0 = arith.constant 0 : index
    %c0_0 = arith.constant 0 : index
    %0 = vector.load %arg2[%c0, %c0_0] : memref<2x32xf32, #tpu.memory_space<vmem>>, vector<1x32xf32>
    %cst = arith.constant 0.055555556 : f32
    %1 = vector.broadcast %cst : f32 to vector<1x32xf32>
    %2 = arith.mulf %0, %1 : vector<1x32xf32>
    %c1 = arith.constant 1 : index
    %c0_1 = arith.constant 0 : index
    %3 = vector.load %arg2[%c1, %c0_1] : memref<2x32xf32, #tpu.memory_space<vmem>>, vector<1x32xf32>
    %cst_2 = arith.constant 0.055555556 : f32
    %4 = vector.broadcast %cst_2 : f32 to vector<1x32xf32>
    %5 = arith.mulf %3, %4 : vector<1x32xf32>
    %6 = arith.mulf %2, %2 : vector<1x32xf32>
    %7 = arith.subf %5, %6 : vector<1x32xf32>
    %cst_3 = arith.constant 0.000000e+00 : f32
    %8 = vector.broadcast %cst_3 : f32 to vector<1x32xf32>
    %9 = arith.maximumf %7, %8 : vector<1x32xf32>
    %cst_4 = arith.constant 9.99999974E-6 : f32
    %10 = vector.broadcast %cst_4 : f32 to vector<1x32xf32>
    %11 = arith.addf %9, %10 : vector<1x32xf32>
    %12 = math.rsqrt %11 : vector<1x32xf32>
    %c0_5 = arith.constant 0 : index
    %c0_6 = arith.constant 0 : index
    %13 = vector.load %arg3[%c0_5, %c0_6] : memref<2x32xf32, #tpu.memory_space<vmem>>, vector<1x32xf32>
    %14 = arith.mulf %12, %13 : vector<1x32xf32>
    %c1_7 = arith.constant 1 : index
    %c0_8 = arith.constant 0 : index
    %15 = vector.load %arg3[%c1_7, %c0_8] : memref<2x32xf32, #tpu.memory_space<vmem>>, vector<1x32xf32>
    %16 = arith.mulf %2, %14 : vector<1x32xf32>
    %17 = arith.subf %15, %16 : vector<1x32xf32>
    %c0_9 = arith.constant 0 : index
    %c0_10 = arith.constant 0 : index
    %18 = vector.load %arg1[%c0_9, %c0_10] : memref<32x32xf32, #tpu.memory_space<vmem>>, vector<32x32xf32>
    %19 = vector.broadcast %14 : vector<1x32xf32> to vector<32x32xf32>
    %20 = arith.mulf %18, %19 : vector<32x32xf32>
    %21 = vector.broadcast %17 : vector<1x32xf32> to vector<32x32xf32>
    %22 = arith.addf %20, %21 : vector<32x32xf32>
    %cst_11 = arith.constant 0.000000e+00 : f32
    %23 = vector.broadcast %cst_11 : f32 to vector<32x32xf32>
    %24 = arith.cmpf oge, %22, %23 : vector<32x32xf32>
    %cst_12 = arith.constant 2.000000e-01 : f32
    %25 = vector.broadcast %cst_12 : f32 to vector<32x32xf32>
    %26 = arith.mulf %25, %22 : vector<32x32xf32>
    %27 = arith.select %24, %22, %26 : vector<32x32xi1>, vector<32x32xf32>
    %c0_13 = arith.constant 0 : index
    %c0_14 = arith.constant 0 : index
    %28 = vector.load %arg4[%c0_13, %c0_14] : memref<32x32xf32, #tpu.memory_space<vmem>>, vector<32x32xf32>
    tpu.vector_store %arg4[%c0_13, %c0_14], %27 {strides = array<i32>} : memref<32x32xf32, #tpu.memory_space<vmem>>, vector<32x32xf32>,
    return
  }
  func.func @transform_0(%arg0: i32) -> (i32, i32) {
    %c0_i32 = arith.constant 0 : i32
    %c0_i32_0 = arith.constant 0 : i32
    return %arg0, %c0_i32 : i32, i32
  }
  func.func @transform_1(%arg0: i32) -> (i32, i32) {
    %c0_i32 = arith.constant 0 : i32
    %c0_i32_0 = arith.constant 0 : i32
    %c0_i32_1 = arith.constant 0 : i32
    return %c0_i32, %c0_i32_0 : i32, i32
  }
  func.func @transform_2(%arg0: i32) -> (i32, i32) {
    %c0_i32 = arith.constant 0 : i32
    %c0_i32_0 = arith.constant 0 : i32
    %c0_i32_1 = arith.constant 0 : i32
    return %c0_i32, %c0_i32_0 : i32, i32
  }
  func.func @transform_3(%arg0: i32) -> (i32, i32) {
    %c0_i32 = arith.constant 0 : i32
    %c0_i32_0 = arith.constant 0 : i32
    return %arg0, %c0_i32 : i32, i32
  }
}

module attributes {stable_mosaic.version = 11 : i64} {
  func.func @_conv_stats_kernel(%arg0: i32, %arg1: memref<32x256xbf16, #tpu.memory_space<vmem>>, %arg2: memref<256x32xbf16, #tpu.memory_space<vmem>>, %arg3: memref<1x32xf32, #tpu.memory_space<vmem>>, %arg4: memref<32x32xf32, #tpu.memory_space<vmem>>, %arg5: memref<2x32xf32, #tpu.memory_space<vmem>>) attributes {dimension_semantics = [#tpu.dimension_semantics<arbitrary>], iteration_bounds = array<i64: 1>, scalar_prefetch = 0 : i64, scratch_operands = 0 : i64, tpu.core_type = #tpu.core_type<tc>, window_params = [{transform_indices = @transform_0, window_bounds = array<i64: 32, 256>}, {pipeline_mode = #tpu.pipeline_mode<synchronous>, transform_indices = @transform_1, window_bounds = array<i64: 256, 32>}, {pipeline_mode = #tpu.pipeline_mode<synchronous>, transform_indices = @transform_2, window_bounds = array<i64: 1, 32>}, {transform_indices = @transform_3, window_bounds = array<i64: 32, 32>}, {pipeline_mode = #tpu.pipeline_mode<synchronous>, transform_indices = @transform_4, window_bounds = array<i64: 2, 32>}]} {
    %c0_i32 = arith.constant 0 : i32
    %0 = arith.cmpi eq, %arg0, %c0_i32 : i32
    %1 = arith.extui %0 : i1 to i32
    %c0_i32_0 = arith.constant 0 : i32
    %2 = arith.cmpi ne, %1, %c0_i32_0 : i32
    scf.if %2 {
      %cst_15 = arith.constant 0.000000e+00 : f32
      %27 = vector.broadcast %cst_15 : f32 to vector<2x32xf32>
      %c0_16 = arith.constant 0 : index
      %c0_17 = arith.constant 0 : index
      %28 = vector.load %arg5[%c0_16, %c0_17] : memref<2x32xf32, #tpu.memory_space<vmem>>, vector<2x32xf32>
      tpu.vector_store %arg5[%c0_16, %c0_17], %27 {strides = array<i32>} : memref<2x32xf32, #tpu.memory_space<vmem>>, vector<2x32xf32>,
    } else {
    }
    %c0 = arith.constant 0 : index
    %c0_1 = arith.constant 0 : index
    %3 = vector.load %arg1[%c0, %c0_1] : memref<32x256xbf16, #tpu.memory_space<vmem>>, vector<32x256xbf16>
    %c0_2 = arith.constant 0 : index
    %c0_3 = arith.constant 0 : index
    %4 = vector.load %arg2[%c0_2, %c0_3] : memref<256x32xbf16, #tpu.memory_space<vmem>>, vector<256x32xbf16>
    %cst = arith.constant dense<0.000000e+00> : vector<32x32xf32>
    %5 = tpu.matmul %3, %4, %cst {dimension_numbers = #tpu.dot_dimension_numbers<[1], [0], [0], [1], [0, 0, 1, 1], [], []>} : vector<32x256xbf16>, vector<256x32xbf16>, vector<32x32xf32> -> vector<32x32xf32>
    %c0_4 = arith.constant 0 : index
    %c0_5 = arith.constant 0 : index
    %6 = vector.load %arg3[%c0_4, %c0_5] : memref<1x32xf32, #tpu.memory_space<vmem>>, vector<1x32xf32>
    %7 = vector.broadcast %6 : vector<1x32xf32> to vector<32x32xf32>
    %8 = arith.addf %5, %7 : vector<32x32xf32>
    %c0_6 = arith.constant 0 : index
    %c0_7 = arith.constant 0 : index
    %9 = vector.load %arg4[%c0_6, %c0_7] : memref<32x32xf32, #tpu.memory_space<vmem>>, vector<32x32xf32>
    tpu.vector_store %arg4[%c0_6, %c0_7], %8 {strides = array<i32>} : memref<32x32xf32, #tpu.memory_space<vmem>>, vector<32x32xf32>,
    %c32_i32 = arith.constant 32 : i32
    %10 = arith.muli %arg0, %c32_i32 : i32
    %11 = tpu.iota {dimensions = array<i32: 0>} : vector<32x32xi32>
    %12 = vector.broadcast %10 : i32 to vector<32x32xi32>
    %13 = arith.addi %12, %11 : vector<32x32xi32>
    %c18_i32 = arith.constant 18 : i32
    %14 = vector.broadcast %c18_i32 : i32 to vector<32x32xi32>
    %15 = arith.cmpi slt, %13, %14 : vector<32x32xi32>
    %cst_8 = arith.constant 0.000000e+00 : f32
    %16 = vector.broadcast %cst_8 : f32 to vector<32x32xf32>
    %17 = arith.select %15, %8, %16 : vector<32x32xi1>, vector<32x32xf32>
    %cst_9 = arith.constant dense<0.000000e+00> : vector<32xf32>
    %18 = vector.multi_reduction <add>, %17, %cst_9 [0] : vector<32x32xf32> to vector<32xf32>
    %19 = vector.shape_cast %18 : vector<32xf32> to vector<1x32xf32>
    %20 = arith.mulf %17, %17 : vector<32x32xf32>
    %cst_10 = arith.constant dense<0.000000e+00> : vector<32xf32>
    %21 = vector.multi_reduction <add>, %20, %cst_10 [0] : vector<32x32xf32> to vector<32xf32>
    %22 = vector.shape_cast %21 : vector<32xf32> to vector<1x32xf32>
    %c0_11 = arith.constant 0 : index
    %c0_12 = arith.constant 0 : index
    %23 = vector.load %arg5[%c0_11, %c0_12] : memref<2x32xf32, #tpu.memory_space<vmem>>, vector<2x32xf32>
    %24 = tpu.concatenate %19, %22 in 0 : vector<1x32xf32>, vector<1x32xf32> -> vector<2x32xf32>
    %25 = arith.addf %23, %24 : vector<2x32xf32>
    %c0_13 = arith.constant 0 : index
    %c0_14 = arith.constant 0 : index
    %26 = vector.load %arg5[%c0_13, %c0_14] : memref<2x32xf32, #tpu.memory_space<vmem>>, vector<2x32xf32>
    tpu.vector_store %arg5[%c0_13, %c0_14], %25 {strides = array<i32>} : memref<2x32xf32, #tpu.memory_space<vmem>>, vector<2x32xf32>,
    return
  }
  func.func @transform_0(%arg0: i32) -> (i32, i32) {
    %c0_i32 = arith.constant 0 : i32
    %c0_i32_0 = arith.constant 0 : i32
    return %arg0, %c0_i32 : i32, i32
  }
  func.func @transform_1(%arg0: i32) -> (i32, i32) {
    %c0_i32 = arith.constant 0 : i32
    %c0_i32_0 = arith.constant 0 : i32
    %c0_i32_1 = arith.constant 0 : i32
    return %c0_i32, %c0_i32_0 : i32, i32
  }
  func.func @transform_2(%arg0: i32) -> (i32, i32) {
    %c0_i32 = arith.constant 0 : i32
    %c0_i32_0 = arith.constant 0 : i32
    %c0_i32_1 = arith.constant 0 : i32
    return %c0_i32, %c0_i32_0 : i32, i32
  }
  func.func @transform_3(%arg0: i32) -> (i32, i32) {
    %c0_i32 = arith.constant 0 : i32
    %c0_i32_0 = arith.constant 0 : i32
    return %arg0, %c0_i32 : i32, i32
  }
  func.func @transform_4(%arg0: i32) -> (i32, i32) {
    %c0_i32 = arith.constant 0 : i32
    %c0_i32_0 = arith.constant 0 : i32
    %c0_i32_1 = arith.constant 0 : i32
    return %c0_i32, %c0_i32_0 : i32, i32
  }
}

module attributes {stable_mosaic.version = 11 : i64} {
  func.func @_conv_act_kernel(%arg0: i32, %arg1: memref<16x512xbf16, #tpu.memory_space<vmem>>, %arg2: memref<512x1xbf16, #tpu.memory_space<vmem>>, %arg3: memref<1x1xf32, #tpu.memory_space<vmem>>, %arg4: memref<16x1xf32, #tpu.memory_space<vmem>>) attributes {dimension_semantics = [#tpu.dimension_semantics<parallel>], iteration_bounds = array<i64: 1>, scalar_prefetch = 0 : i64, scratch_operands = 0 : i64, tpu.core_type = #tpu.core_type<tc>, window_params = [{transform_indices = @transform_0, window_bounds = array<i64: 16, 512>}, {pipeline_mode = #tpu.pipeline_mode<synchronous>, transform_indices = @transform_1, window_bounds = array<i64: 512, 1>}, {pipeline_mode = #tpu.pipeline_mode<synchronous>, transform_indices = @transform_2, window_bounds = array<i64: 1, 1>}, {transform_indices = @transform_3, window_bounds = array<i64: 16, 1>}]} {
    %c0 = arith.constant 0 : index
    %c0_0 = arith.constant 0 : index
    %0 = vector.load %arg1[%c0, %c0_0] : memref<16x512xbf16, #tpu.memory_space<vmem>>, vector<16x512xbf16>
    %c0_1 = arith.constant 0 : index
    %c0_2 = arith.constant 0 : index
    %1 = vector.load %arg2[%c0_1, %c0_2] : memref<512x1xbf16, #tpu.memory_space<vmem>>, vector<512x1xbf16>
    %cst = arith.constant dense<0.000000e+00> : vector<16x1xf32>
    %2 = tpu.matmul %0, %1, %cst {dimension_numbers = #tpu.dot_dimension_numbers<[1], [0], [0], [1], [0, 0, 1, 1], [], []>} : vector<16x512xbf16>, vector<512x1xbf16>, vector<16x1xf32> -> vector<16x1xf32>
    %c0_3 = arith.constant 0 : index
    %c0_4 = arith.constant 0 : index
    %3 = vector.load %arg3[%c0_3, %c0_4] : memref<1x1xf32, #tpu.memory_space<vmem>>, vector<1x1xf32>
    %4 = vector.broadcast %3 : vector<1x1xf32> to vector<16x1xf32>
    %5 = arith.addf %2, %4 : vector<16x1xf32>
    %cst_5 = arith.constant 0.000000e+00 : f32
    %6 = vector.broadcast %cst_5 : f32 to vector<16x1xf32>
    %7 = arith.subf %6, %5 : vector<16x1xf32>
    %8 = math.exp %7 : vector<16x1xf32>
    %cst_6 = arith.constant 1.000000e+00 : f32
    %9 = vector.broadcast %cst_6 : f32 to vector<16x1xf32>
    %10 = arith.addf %9, %8 : vector<16x1xf32>
    %11 = tpu.reciprocal %10 {approx = true} : vector<16x1xf32> -> vector<16x1xf32>
    %c0_7 = arith.constant 0 : index
    %c0_8 = arith.constant 0 : index
    %12 = vector.load %arg4[%c0_7, %c0_8] : memref<16x1xf32, #tpu.memory_space<vmem>>, vector<16x1xf32>
    tpu.vector_store %arg4[%c0_7, %c0_8], %11 {strides = array<i32>} : memref<16x1xf32, #tpu.memory_space<vmem>>, vector<16x1xf32>,
    return
  }
  func.func @transform_0(%arg0: i32) -> (i32, i32) {
    %c0_i32 = arith.constant 0 : i32
    %c0_i32_0 = arith.constant 0 : i32
    return %arg0, %c0_i32 : i32, i32
  }
  func.func @transform_1(%arg0: i32) -> (i32, i32) {
    %c0_i32 = arith.constant 0 : i32
    %c0_i32_0 = arith.constant 0 : i32
    %c0_i32_1 = arith.constant 0 : i32
    return %c0_i32, %c0_i32_0 : i32, i32
  }
  func.func @transform_2(%arg0: i32) -> (i32, i32) {
    %c0_i32 = arith.constant 0 : i32
    %c0_i32_0 = arith.constant 0 : i32
    %c0_i32_1 = arith.constant 0 : i32
    return %c0_i32, %c0_i32_0 : i32, i32
  }
  func.func @transform_3(%arg0: i32) -> (i32, i32) {
    %c0_i32 = arith.constant 0 : i32
    %c0_i32_0 = arith.constant 0 : i32
    return %arg0, %c0_i32 : i32, i32
  }
}

</mosaic_0001>

<bundles_post_ra>
// kernel: discriminator_forward.6
= control target key start
LH: loop header
LB: loop body
LE: loop exit
PB: predicated region body
PF: predicated region fallthrough
CT: control target
= control target key end

     0   :  { %vm128_vm0 = vcmask 523264   ;;  %vm292_vm1 = vcmask 64512   ;;  %s609_s1 = inlined_call_operand.vmem [shape: bf16[64,8], index: 1, kind: input, shape index: {}]   ;;  %s610_s2 = inlined_call_operand.vmem [shape: f32[1,8], index: 2, kind: input, shape index: {}]   ;;  %s611_s0 = inlined_call_operand.vmem [shape: bf16[176,64], index: 0, kind: input, shape index: {}]   ;;  %s612_s3 = inlined_call_operand.vmem [shape: f32[176,8], index: 3, kind: output, shape index: {}]  }
   0x1   :  { %v404_v0 = vld [vmem:[%s609_s1 + $0x18] sm:$0xff]  ;;  %v403_v1 = vld [vmem:[%s609_s1 + $0x10] sm:$0xff]  ;;  %v402_v2 = vld [vmem:[%s609_s1 + $0x8] sm:$0xff] }
   0x2   :  { %166 = vmatpush.bf16.msra.mxu0 %v404_v0  ;;  %405 = vmatpush.bf16.msra.mxu1 %v404_v0  ;;  %v401_v3 = vld [vmem:[%s609_s1] sm:$0xff]  ;;  %v393_v5 = vld [vmem:[%s611_s0 + $0x18] sm:$0xff]  ;;  %v396_v6 = vld [vmem:[%s611_s0 + $0x30] sm:$0xff] }
   0x3   :  { %406 = vmatpush.bf16.msra.mxu2 %v404_v0  ;;  %407 = vmatpush.bf16.msra.mxu3 %v404_v0  ;;  %v390_v4 = vld [vmem:[%s611_s0] sm:$0xff]  ;;  %v399_v7 = vld [vmem:[%s611_s0 + $0x48] sm:$0xff]  ;;  %v397_v10 = vld [vmem:[%s611_s0 + $0x38] sm:$0xff] }
   0x4   :  { %v391_v8 = vld [vmem:[%s611_s0 + $0x8] sm:$0xff]  ;;  %v394_v9 = vld [vmem:[%s611_s0 + $0x20] sm:$0xff]  ;;  %v400_v11 = vld [vmem:[%s611_s0 + $0x50] sm:$0xff] }
   0x5   :  { %v392_v12 = vld [vmem:[%s611_s0 + $0x10] sm:$0xff]  ;;  %v395_v13 = vld [vmem:[%s611_s0 + $0x28] sm:$0xff]  ;;  %v398_v14 = vld [vmem:[%s611_s0 + $0x40] sm:$0xff] }
   0x6   :  { %167 = vmatpush.bf16.msra.mxu0 %v403_v1  ;;  %408 = vmatpush.bf16.msra.mxu1 %v403_v1  ;;  %v497_v15 = vld [vmem:[%s610_s2] ss:$0 sm:$0xff] }
   0x7   :  { %409 = vmatpush.bf16.msra.mxu2 %v403_v1  ;;  %410 = vmatpush.bf16.msra.mxu3 %v403_v1 }
   0xa   :  { %168 = vmatpush.bf16.msra.mxu0 %v402_v2  ;;  %411 = vmatpush.bf16.msra.mxu1 %v402_v2 }
   0xb   :  { %412 = vmatpush.bf16.msra.mxu2 %v402_v2  ;;  %413 = vmatpush.bf16.msra.mxu3 %v402_v2 }
   0xe   :  { %169 = vmatpush.bf16.msra.mxu0 %v401_v3  ;;  %414 = vmatpush.bf16.msra.mxu1 %v401_v3 }
   0xf   :  { %415 = vmatpush.bf16.msra.mxu2 %v401_v3  ;;  %416 = vmatpush.bf16.msra.mxu3 %v401_v3 }
  0x11   :  { %379 = vmatmul.msk.bf16.vlgmr.msra.gmra.mxu0 %vm128_vm0, %v390_v4  ;;  %382 = vmatmul.msk.bf16.vlgmr.msra.gmra.mxu1 %vm128_vm0, %v393_v5 }
  0x12   :  { %385 = vmatmul.msk.bf16.vlgmr.msra.gmra.mxu2 %vm128_vm0, %v396_v6  ;;  %388 = vmatmul.msk.bf16.vlgmr.msra.gmra.mxu3 %vm128_vm0, %v399_v7 }
  0x21   :  { %380 = vmatmul.msk.bf16.gmra.mxu0 %vm128_vm0, %v391_v8  ;;  %383 = vmatmul.msk.bf16.gmra.mxu1 %vm128_vm0, %v394_v9 }
  0x22   :  { %386 = vmatmul.msk.bf16.gmra.mxu2 %vm128_vm0, %v397_v10  ;;  %389 = vmatmul.msk.bf16.gmra.mxu3 %vm128_vm0, %v400_v11 }
  0x31   :  { %381 = vmatmul.msk.bf16.gmra.mxu0 %vm128_vm0, %v392_v12  ;;  %384 = vmatmul.msk.bf16.gmra.mxu1 %vm128_vm0, %v395_v13 }
  0x32   :  { %387 = vmatmul.msk.bf16.gmra.mxu2 %vm128_vm0, %v398_v14 }
  0x8e   :  { %v171_v16 = vpop.f32.mrf.mxu0  ;;  %v186_v17 = vpop.f32.mrf.mxu1 }
  0x8f   :  { %v172_v18 = vadd.f32 %v497_v15, %v171_v16  ;;  %v187_v19 = vadd.f32 %v497_v15, %v186_v17 }
  0x91   :  { %vm226_vm2 = vcmp.ge.f32.partialorder %v172_v18, 0.0  ;;  %v248_v20 = vmul.f32 0.2, %v172_v18  ;;  %vm232_vm3 = vcmp.ge.f32.partialorder %v187_v19, 0.0  ;;  %v254_v21 = vmul.f32 0.2, %v187_v19 }
  0x93   :  { %v270_v22 = vsel %vm226_vm2, %v172_v18, %v248_v20  ;;  %v276_v23 = vsel %vm232_vm3, %v187_v19, %v254_v21 }
  0x94   :  { %293 = vst.msk [vmem:[%s612_s3] sm:$0xff] %vm292_vm1, %v270_v22 }
  0x95   :  { %299 = vst.msk [vmem:[%s612_s3 + $0x30] sm:$0xff] %vm292_vm1, %v276_v23  ;;  %v201_v24 = vpop.f32.mrf.mxu2  ;;  %v216_v25 = vpop.f32.mrf.mxu3 }
  0x96   :  { %v202_v26 = vadd.f32 %v497_v15, %v201_v24  ;;  %v173_v27 = vpop.f32.mrf.mxu0  ;;  %v188_v28 = vpop.f32.mrf.mxu1  ;;  %v217_v29 = vadd.f32 %v497_v15, %v216_v25 }
  0x97   :  { %v174_v30 = vadd.f32 %v497_v15, %v173_v27  ;;  %v189_v31 = vadd.f32 %v497_v15, %v188_v28 }
  0x98   :  { %vm238_vm4 = vcmp.ge.f32.partialorder %v202_v26, 0.0  ;;  %v260_v32 = vmul.f32 0.2, %v202_v26  ;;  %vm244_vm5 = vcmp.ge.f32.partialorder %v217_v29, 0.0  ;;  %v266_v33 = vmul.f32 0.2, %v217_v29 }
  0x99   :  { %vm227_vm6 = vcmp.ge.f32.partialorder %v174_v30, 0.0  ;;  %v249_v34 = vmul.f32 0.2, %v174_v30  ;;  %vm233_vm7 = vcmp.ge.f32.partialorder %v189_v31, 0.0  ;;  %v255_v35 = vmul.f32 0.2, %v189_v31 }
  0x9a   :  { %v282_v36 = vsel %vm238_vm4, %v202_v26, %v260_v32  ;;  %v288_v39 = vsel %vm244_vm5, %v217_v29, %v266_v33 }
  0x9b   :  { %305 = vst.msk [vmem:[%s612_s3 + $0x60] sm:$0xff] %vm292_vm1, %v282_v36  ;;  %v271_v37 = vsel %vm227_vm6, %v174_v30, %v249_v34  ;;  %v277_v38 = vsel %vm233_vm7, %v189_v31, %v255_v35 }
  0x9c   :  { %294 = vst.msk [vmem:[%s612_s3 + $0x8] sm:$0xff] %vm292_vm1, %v271_v37 }
  0x9d   :  { %300 = vst.msk [vmem:[%s612_s3 + $0x38] sm:$0xff] %vm292_vm1, %v277_v38  ;;  %v203_v40 = vpop.f32.mrf.mxu2  ;;  %v218_v41 = vpop.f32.mrf.mxu3 }
  0x9e   :  { %311 = vst.msk [vmem:[%s612_s3 + $0x90] sm:$0xff] %vm292_vm1, %v288_v39  ;;  %v204_v42 = vadd.f32 %v497_v15, %v203_v40  ;;  %v176_v43 = vpop.f32.mrf.mxu0  ;;  %v191_v44 = vpop.f32.mrf.mxu1  ;;  %v219_v45 = vadd.f32 %v497_v15, %v218_v41 }
  0x9f   :  { %v177_v46 = vadd.f32 %v497_v15, %v176_v43  ;;  %v192_v47 = vadd.f32 %v497_v15, %v191_v44 }
  0xa0   :  { %vm239_vm8 = vcmp.ge.f32.partialorder %v204_v42, 0.0  ;;  %v261_v48 = vmul.f32 0.2, %v204_v42  ;;  %vm245_vm9 = vcmp.ge.f32.partialorder %v219_v45, 0.0  ;;  %v267_v49 = vmul.f32 0.2, %v219_v45 }
  0xa1   :  { %vm228_vm10 = vcmp.ge.f32.partialorder %v177_v46, 0.0  ;;  %v250_v50 = vmul.f32 0.2, %v177_v46  ;;  %vm234_vm11 = vcmp.ge.f32.partialorder %v192_v47, 0.0  ;;  %v256_v51 = vmul.f32 0.2, %v192_v47 }
  0xa2   :  { %v283_v52 = vsel %vm239_vm8, %v204_v42, %v261_v48  ;;  %v289_v55 = vsel %vm245_vm9, %v219_v45, %v267_v49 }
  0xa3   :  { %306 = vst.msk [vmem:[%s612_s3 + $0x68] sm:$0xff] %vm292_vm1, %v283_v52  ;;  %v272_v53 = vsel %vm228_vm10, %v177_v46, %v250_v50  ;;  %v278_v54 = vsel %vm234_vm11, %v192_v47, %v256_v51 }
  0xa4   :  { %295 = vst.msk [vmem:[%s612_s3 + $0x10] sm:$0xff] %vm292_vm1, %v272_v53 }
  0xa5   :  { %301 = vst.msk [vmem:[%s612_s3 + $0x40] sm:$0xff] %vm292_vm1, %v278_v54  ;;  %v206_v56 = vpop.f32.mrf.mxu2  ;;  %v221_v57 = vpop.f32.mrf.mxu3 }
  0xa6   :  { %312 = vst.msk [vmem:[%s612_s3 + $0x98] sm:$0xff] %vm292_vm1, %v289_v55  ;;  %v207_v58 = vadd.f32 %v497_v15, %v206_v56  ;;  %v178_v59 = vpop.f32.mrf.mxu0  ;;  %v193_v60 = vpop.f32.mrf.mxu1  ;;  %v222_v61 = vadd.f32 %v497_v15, %v221_v57 }
  0xa7   :  { %v179_v62 = vadd.f32 %v497_v15, %v178_v59  ;;  %v194_v63 = vadd.f32 %v497_v15, %v193_v60 }
  0xa8   :  { %vm240_vm12 = vcmp.ge.f32.partialorder %v207_v58, 0.0  ;;  %v262_v0 = vmul.f32 0.2, %v207_v58  ;;  %vm246_vm13 = vcmp.ge.f32.partialorder %v222_v61, 0.0  ;;  %v268_v1 = vmul.f32 0.2, %v222_v61 }
  0xa9   :  { %vm229_vm14 = vcmp.ge.f32.partialorder %v179_v62, 0.0  ;;  %v251_v2 = vmul.f32 0.2, %v179_v62  ;;  %vm235_vm15 = vcmp.ge.f32.partialorder %v194_v63, 0.0  ;;  %v257_v3 = vmul.f32 0.2, %v194_v63 }
  0xaa   :  { %v284_v4 = vsel %vm240_vm12, %v207_v58, %v262_v0  ;;  %v290_v7 = vsel %vm246_vm13, %v222_v61, %v268_v1 }
  0xab   :  { %307 = vst.msk [vmem:[%s612_s3 + $0x70] sm:$0xff] %vm292_vm1, %v284_v4  ;;  %v273_v5 = vsel %vm229_vm14, %v179_v62, %v251_v2  ;;  %v279_v6 = vsel %vm235_vm15, %v194_v63, %v257_v3 }
  0xac   :  { %296 = vst.msk [vmem:[%s612_s3 + $0x18] sm:$0xff] %vm292_vm1, %v273_v5 }
  0xad   :  { %302 = vst.msk [vmem:[%s612_s3 + $0x48] sm:$0xff] %vm292_vm1, %v279_v6  ;;  %v208_v8 = vpop.f32.mrf.mxu2  ;;  %v223_v9 = vpop.f32.mrf.mxu3 }
  0xae   :  { %313 = vst.msk [vmem:[%s612_s3 + $0xa0] sm:$0xff] %vm292_vm1, %v290_v7  ;;  %v209_v10 = vadd.f32 %v497_v15, %v208_v8  ;;  %v181_v11 = vpop.f32.mrf.mxu0  ;;  %v196_v12 = vpop.f32.mrf.mxu1  ;;  %v224_v13 = vadd.f32 %v497_v15, %v223_v9 }
  0xaf   :  { %v182_v14 = vadd.f32 %v497_v15, %v181_v11  ;;  %v197_v16 = vadd.f32 %v497_v15, %v196_v12 }
  0xb0   :  { %vm241_vm0 = vcmp.ge.f32.partialorder %v209_v10, 0.0  ;;  %v263_v17 = vmul.f32 0.2, %v209_v10  ;;  %vm247_vm2 = vcmp.ge.f32.partialorder %v224_v13, 0.0  ;;  %v269_v18 = vmul.f32 0.2, %v224_v13 }
  0xb1   :  { %vm230_vm3 = vcmp.ge.f32.partialorder %v182_v14, 0.0  ;;  %v252_v19 = vmul.f32 0.2, %v182_v14  ;;  %vm236_vm4 = vcmp.ge.f32.partialorder %v197_v16, 0.0  ;;  %v258_v20 = vmul.f32 0.2, %v197_v16 }
  0xb2   :  { %v285_v21 = vsel %vm241_vm0, %v209_v10, %v263_v17  ;;  %v291_v24 = vsel %vm247_vm2, %v224_v13, %v269_v18 }
  0xb3   :  { %308 = vst.msk [vmem:[%s612_s3 + $0x78] sm:$0xff] %vm292_vm1, %v285_v21  ;;  %v274_v22 = vsel %vm230_vm3, %v182_v14, %v252_v19  ;;  %v280_v23 = vsel %vm236_vm4, %v197_v16, %v258_v20 }
  0xb4   :  { %297 = vst.msk [vmem:[%s612_s3 + $0x20] sm:$0xff] %vm292_vm1, %v274_v22 }
  0xb5   :  { %303 = vst.msk [vmem:[%s612_s3 + $0x50] sm:$0xff] %vm292_vm1, %v280_v23  ;;  %v211_v25 = vpop.f32.mrf.mxu2 }
  0xb6   :  { %314 = vst.msk [vmem:[%s612_s3 + $0xa8] sm:$0xff] %vm292_vm1, %v291_v24  ;;  %v212_v26 = vadd.f32 %v497_v15, %v211_v25  ;;  %v183_v27 = vpop.f32.mrf.mxu0  ;;  %v198_v28 = vpop.f32.mrf.mxu1 }
  0xb7   :  { %v184_v29 = vadd.f32 %v497_v15, %v183_v27  ;;  %v199_v30 = vadd.f32 %v497_v15, %v198_v28 }
  0xb8   :  { %vm242_vm5 = vcmp.ge.f32.partialorder %v212_v26, 0.0  ;;  %v264_v31 = vmul.f32 0.2, %v212_v26 }
  0xb9   :  { %vm231_vm6 = vcmp.ge.f32.partialorder %v184_v29, 0.0  ;;  %v253_v32 = vmul.f32 0.2, %v184_v29  ;;  %vm237_vm7 = vcmp.ge.f32.partialorder %v199_v30, 0.0  ;;  %v259_v33 = vmul.f32 0.2, %v199_v30 }
  0xba   :  { %v286_v34 = vsel %vm242_vm5, %v212_v26, %v264_v31 }
  0xbb   :  { %309 = vst.msk [vmem:[%s612_s3 + $0x80] sm:$0xff] %vm292_vm1, %v286_v34  ;;  %v275_v35 = vsel %vm231_vm6, %v184_v29, %v253_v32  ;;  %v281_v36 = vsel %vm237_vm7, %v199_v30, %v259_v33 }
  0xbc   :  { %298 = vst.msk [vmem:[%s612_s3 + $0x28] sm:$0xff] %vm292_vm1, %v275_v35 }
  0xbd   :  { %304 = vst.msk [vmem:[%s612_s3 + $0x58] sm:$0xff] %vm292_vm1, %v281_v36  ;;  %v213_v37 = vpop.f32.mrf.mxu2 }
  0xbe   :  { %v214_v38 = vadd.f32 %v497_v15, %v213_v37 }
  0xc0   :  { %vm243_vm8 = vcmp.ge.f32.partialorder %v214_v38, 0.0  ;;  %v265_v39 = vmul.f32 0.2, %v214_v38 }
  0xc2   :  { %v287_v40 = vsel %vm243_vm8, %v214_v38, %v265_v39 }
  0xc3   :  { %310 = vst.msk [vmem:[%s612_s3 + $0x88] sm:$0xff] %vm292_vm1, %v287_v40 }

// kernel: discriminator_forward.8
= control target key start
LH: loop header
LB: loop body
LE: loop exit
PB: predicated region body
PF: predicated region fallthrough
CT: control target
= control target key end

     0   :  { %vm87_vm3 = vcmask 130048   ;;  %s190_s1 = inlined_call_operand.vmem [shape: f32[2,16], index: 1, kind: input, shape index: {}]   ;;  %s191_s2 = inlined_call_operand.vmem [shape: f32[2,16], index: 2, kind: input, shape index: {}]   ;;  %s192_s0 = inlined_call_operand.vmem [shape: f32[64,16], index: 0, kind: input, shape index: {}]   ;;  %s193_s3 = inlined_call_operand.vmem [shape: f32[64,16], index: 3, kind: output, shape index: {}]  }
   0x1   :  { %v14_v0 = vld [vmem:[%s190_s1] sm:$0x1]  ;;  %v16_v1 = vld [vmem:[%s190_s1 + $0x1] sm:$0x1]  ;;  %v38_v19 = vld [vmem:[%s192_s0 + $0x8] sm:$0xff] }
   0x2   :  { %v15_v2 = vmul.f32 0.02, %v14_v0  ;;  %v17_v3 = vmul.f32 0.02, %v16_v1  ;;  %v32_v14 = vld [vmem:[%s191_s2] sm:$0x1] }
   0x3   :  { %v34_v17 = vld [vmem:[%s191_s2 + $0x1] sm:$0x1]  ;;  %v39_v20 = vld [vmem:[%s192_s0 + $0x10] sm:$0xff]  ;;  %v40_v21 = vld [vmem:[%s192_s0 + $0x18] sm:$0xff] }
   0x4   :  { %v18_v4 = vmul.f32 %v15_v2, %v15_v2  ;;  %v37_v18 = vld [vmem:[%s192_s0] sm:$0xff]  ;;  %v42_v25 = vld [vmem:[%s192_s0 + $0x28] sm:$0xff]  ;;  %v43_v26 = vld [vmem:[%s192_s0 + $0x30] sm:$0xff] }
   0x5   :  { %v41_v24 = vld [vmem:[%s192_s0 + $0x20] sm:$0xff]  ;;  %v44_v27 = vld [vmem:[%s192_s0 + $0x38] sm:$0xff] }
   0x6   :  { %v19_v5 = vsub.f32 %v17_v3, %v18_v4 }
   0x8   :  { %v20_v6 = vmax.f32 %v19_v5, 0.0 }
   0xa   :  { %v21_v7 = vadd.f32 1e-05, %v20_v6 }
   0xc   :  { %100 = vrsqrt.f32 %v21_v7  ;;  %vm28_vm0 = vweird.f32 %v21_v7 }
  0x12   :  { %v101_v8 = vpop.eup %100 }
  0x13   :  { %v23_v9 = vmul.f32 %v101_v8, %v21_v7  ;;  %vm29_vm1 = vweird.f32 %v101_v8 }
  0x14   :  { %vm30_vm2 = vmor %vm28_vm0, %vm29_vm1 }
  0x15   :  { %v24_v10 = vmul.f32 %v101_v8, %v23_v9 }
  0x17   :  { %v25_v11 = vmul.f32 0.5, %v24_v10 }
  0x19   :  { %v26_v12 = vsub.f32 1.5, %v25_v11 }
  0x1b   :  { %v27_v13 = vmul.f32 %v101_v8, %v26_v12 }
  0x1d   :  { %v31_v15 = vsel %vm30_vm2, %v101_v8, %v27_v13 }
  0x1e   :  { %v33_v16 = vmul.f32 %v32_v14, %v31_v15 }
  0x20   :  { %v35_v22 = vmul.f32 %v33_v16, %v15_v2  ;;  %v45_v23 = vperm.slane %v33_v16, 0 }
  0x22   :  { %v36_v28 = vsub.f32 %v34_v17, %v35_v22  ;;  %v46_v29 = vmul.f32 %v45_v23, %v37_v18  ;;  %v47_v30 = vmul.f32 %v45_v23, %v38_v19  ;;  %v48_v31 = vmul.f32 %v45_v23, %v39_v20 }
  0x23   :  { %v49_v32 = vmul.f32 %v45_v23, %v40_v21  ;;  %v50_v33 = vmul.f32 %v45_v23, %v41_v24  ;;  %v51_v34 = vmul.f32 %v45_v23, %v42_v25  ;;  %v52_v35 = vmul.f32 %v45_v23, %v43_v26 }
  0x24   :  { %v54_v36 = vperm.slane %v36_v28, 0  ;;  %v53_v37 = vmul.f32 %v45_v23, %v44_v27 }
  0x26   :  { %v55_v38 = vadd.f32 %v54_v36, %v46_v29  ;;  %v56_v39 = vadd.f32 %v54_v36, %v47_v30  ;;  %v57_v40 = vadd.f32 %v54_v36, %v48_v31  ;;  %v58_v41 = vadd.f32 %v54_v36, %v49_v32 }
  0x27   :  { %v59_v42 = vadd.f32 %v54_v36, %v50_v33  ;;  %v60_v43 = vadd.f32 %v54_v36, %v51_v34  ;;  %v61_v44 = vadd.f32 %v54_v36, %v52_v35  ;;  %v62_v45 = vadd.f32 %v54_v36, %v53_v37 }
  0x28   :  { %vm63_vm4 = vcmp.ge.f32.partialorder %v55_v38, 0.0  ;;  %v71_v46 = vmul.f32 0.2, %v55_v38  ;;  %vm64_vm5 = vcmp.ge.f32.partialorder %v56_v39, 0.0  ;;  %v72_v47 = vmul.f32 0.2, %v56_v39 }
  0x29   :  { %vm65_vm6 = vcmp.ge.f32.partialorder %v57_v40, 0.0  ;;  %v73_v48 = vmul.f32 0.2, %v57_v40  ;;  %vm66_vm7 = vcmp.ge.f32.partialorder %v58_v41, 0.0  ;;  %v74_v49 = vmul.f32 0.2, %v58_v41 }
  0x2a   :  { %v79_v50 = vsel %vm63_vm4, %v55_v38, %v71_v46  ;;  %v80_v51 = vsel %vm64_vm5, %v56_v39, %v72_v47  ;;  %vm67_vm8 = vcmp.ge.f32.partialorder %v59_v42, 0.0  ;;  %v75_v52 = vmul.f32 0.2, %v59_v42 }
  0x2b   :  { %88 = vst.msk [vmem:[%s193_s3] sm:$0xff] %vm87_vm3, %v79_v50  ;;  %v81_v53 = vsel %vm65_vm6, %v57_v40, %v73_v48  ;;  %v82_v54 = vsel %vm66_vm7, %v58_v41, %v74_v49  ;;  %vm68_vm9 = vcmp.ge.f32.partialorder %v60_v43, 0.0  ;;  %v76_v55 = vmul.f32 0.2, %v60_v43 }
  0x2c   :  { %89 = vst.msk [vmem:[%s193_s3 + $0x8] sm:$0xff] %vm87_vm3, %v80_v51  ;;  %v83_v56 = vsel %vm67_vm8, %v59_v42, %v75_v52  ;;  %vm69_vm10 = vcmp.ge.f32.partialorder %v61_v44, 0.0  ;;  %v77_v57 = vmul.f32 0.2, %v61_v44  ;;  %vm70_vm11 = vcmp.ge.f32.partialorder %v62_v45, 0.0 }
  0x2d   :  { %90 = vst.msk [vmem:[%s193_s3 + $0x10] sm:$0xff] %vm87_vm3, %v81_v53  ;;  %v84_v58 = vsel %vm68_vm9, %v60_v43, %v76_v55  ;;  %v78_v59 = vmul.f32 0.2, %v62_v45 }
  0x2e   :  { %91 = vst.msk [vmem:[%s193_s3 + $0x18] sm:$0xff] %vm87_vm3, %v82_v54  ;;  %v85_v60 = vsel %vm69_vm10, %v61_v44, %v77_v57 }
  0x2f   :  { %92 = vst.msk [vmem:[%s193_s3 + $0x20] sm:$0xff] %vm87_vm3, %v83_v56  ;;  %v86_v61 = vsel %vm70_vm11, %v62_v45, %v78_v59 }
  0x30   :  { %93 = vst.msk [vmem:[%s193_s3 + $0x28] sm:$0xff] %vm87_vm3, %v84_v58 }
  0x31   :  { %94 = vst.msk [vmem:[%s193_s3 + $0x30] sm:$0xff] %vm87_vm3, %v85_v60 }
  0x32   :  { %95 = vst.msk [vmem:[%s193_s3 + $0x38] sm:$0xff] %vm87_vm3, %v86_v61 }

// kernel: discriminator_forward.7
= control target key start
LH: loop header
LB: loop body
LE: loop exit
PB: predicated region body
PF: predicated region fallthrough
CT: control target
= control target key end

     0   :  { %vm20_vm0 = vcmask 123904   ;;  %v345_v12 = vmov 0.0   ;;  %v161_v14 = vlaneseq  ;;  %vm151_vm1 = vcmask 130048   ;;  %s467_s1 = inlined_call_operand.vmem [shape: bf16[128,16], index: 1, kind: input, shape index: {}]   ;;  %s468_s2 = inlined_call_operand.vmem [shape: f32[1,16], index: 2, kind: input, shape index: {}]   ;;  %s469_s0 = inlined_call_operand.vmem [shape: bf16[64,128], index: 0, kind: input, shape index: {}]   ;;  %s470_s4 = inlined_call_operand.vmem [shape: f32[2,16], index: 4, kind: output, shape index: {1}]   ;;  %s471_s3 = inlined_call_operand.vmem [shape: f32[64,16], index: 3, kind: output, shape index: {0}]  }
   0x1   :  { %v318_v0 = vld [vmem:[%s467_s1 + $0x38] sm:$0xff]  ;;  %v317_v1 = vld [vmem:[%s467_s1 + $0x30] sm:$0xff]  ;;  %v316_v2 = vld [vmem:[%s467_s1 + $0x28] sm:$0xff]  ;;  %21 = vst.msk [vmem:[%s470_s4] sm:$0x3] %vm20_vm0, %v345_v12  ;;  %vm246_vm3 = vcmask 1040384  }
   0x2   :  { %122 = vmatpush.bf16.msra.mxu0 %v318_v0  ;;  %319 = vmatpush.bf16.msra.mxu1 %v318_v0  ;;  %v315_v3 = vld [vmem:[%s467_s1 + $0x20] sm:$0xff]  ;;  %v314_v4 = vld [vmem:[%s467_s1 + $0x18] sm:$0xff]  ;;  %v313_v5 = vld [vmem:[%s467_s1 + $0x10] sm:$0xff]  ;;  %v162_v19 = vshrl.u32 %v161_v14, 7 }
   0x3   :  { %320 = vmatpush.bf16.msra.mxu2 %v318_v0  ;;  %321 = vmatpush.bf16.msra.mxu3 %v318_v0  ;;  %v312_v6 = vld [vmem:[%s467_s1 + $0x8] sm:$0xff]  ;;  %v311_v7 = vld [vmem:[%s467_s1] sm:$0xff]  ;;  %v309_v10 = vld [vmem:[%s469_s0 + $0x10] sm:$0xff] }
   0x4   :  { %v307_v8 = vld [vmem:[%s469_s0] sm:$0xff]  ;;  %v308_v9 = vld [vmem:[%s469_s0 + $0x8] sm:$0xff]  ;;  %v310_v11 = vld [vmem:[%s469_s0 + $0x18] sm:$0xff]  ;;  %v168_v20 = vadd.s32 48, %v162_v19 }
   0x5   :  { %v344_v13 = vld [vmem:[%s468_s2] ss:$0 sm:$0xff] }
   0x6   :  { %123 = vmatpush.bf16.msra.mxu0 %v317_v1  ;;  %322 = vmatpush.bf16.msra.mxu1 %v317_v1  ;;  %vm185_vm2 = vcmp.lt.s32.totalorder %v168_v20, 50 }
   0x7   :  { %323 = vmatpush.bf16.msra.mxu2 %v317_v1  ;;  %324 = vmatpush.bf16.msra.mxu3 %v317_v1 }
   0xa   :  { %124 = vmatpush.bf16.msra.mxu0 %v316_v2  ;;  %325 = vmatpush.bf16.msra.mxu1 %v316_v2 }
   0xb   :  { %326 = vmatpush.bf16.msra.mxu2 %v316_v2  ;;  %327 = vmatpush.bf16.msra.mxu3 %v316_v2 }
   0xe   :  { %125 = vmatpush.bf16.msra.mxu0 %v315_v3  ;;  %328 = vmatpush.bf16.msra.mxu1 %v315_v3 }
   0xf   :  { %329 = vmatpush.bf16.msra.mxu2 %v315_v3  ;;  %330 = vmatpush.bf16.msra.mxu3 %v315_v3 }
  0x12   :  { %126 = vmatpush.bf16.msra.mxu0 %v314_v4  ;;  %331 = vmatpush.bf16.msra.mxu1 %v314_v4 }
  0x13   :  { %332 = vmatpush.bf16.msra.mxu2 %v314_v4  ;;  %333 = vmatpush.bf16.msra.mxu3 %v314_v4 }
  0x16   :  { %127 = vmatpush.bf16.msra.mxu0 %v313_v5  ;;  %334 = vmatpush.bf16.msra.mxu1 %v313_v5 }
  0x17   :  { %335 = vmatpush.bf16.msra.mxu2 %v313_v5  ;;  %336 = vmatpush.bf16.msra.mxu3 %v313_v5 }
  0x1a   :  { %128 = vmatpush.bf16.msra.mxu0 %v312_v6  ;;  %337 = vmatpush.bf16.msra.mxu1 %v312_v6 }
  0x1b   :  { %338 = vmatpush.bf16.msra.mxu2 %v312_v6  ;;  %339 = vmatpush.bf16.msra.mxu3 %v312_v6 }
  0x1e   :  { %129 = vmatpush.bf16.msra.mxu0 %v311_v7  ;;  %340 = vmatpush.bf16.msra.mxu1 %v311_v7 }
  0x1f   :  { %341 = vmatpush.bf16.msra.mxu2 %v311_v7  ;;  %342 = vmatpush.bf16.msra.mxu3 %v311_v7 }
  0x21   :  { %130 = vmatmul.bf16.vlgmr.msra.gmra.mxu0 %v307_v8  ;;  %135 = vmatmul.bf16.vlgmr.msra.gmra.mxu1 %v308_v9 }
  0x22   :  { %140 = vmatmul.bf16.vlgmr.msra.gmra.mxu2 %v309_v10  ;;  %145 = vmatmul.bf16.vlgmr.msra.gmra.mxu3 %v310_v11 }
  0x9e   :  { %v131_v15 = vpop.f32.mrf.mxu0  ;;  %v136_v16 = vpop.f32.mrf.mxu1 }
  0x9f   :  { %v132_v17 = vadd.f32 %v344_v13, %v131_v15  ;;  %v137_v18 = vadd.f32 %v344_v13, %v136_v16  ;;  %v245_v15 = vld [vmem:[%s470_s4] sm:$0x3] }
  0xa1   :  { %152 = vst.msk [vmem:[%s471_s3] sm:$0xff] %vm151_vm1, %v132_v17  ;;  %v216_v26 = vmul.f32 %v132_v17, %v132_v17  ;;  %v195_v30 = vsel %vm151_vm1, %v132_v17, 0.0  ;;  %v218_v31 = vmul.f32 %v137_v18, %v137_v18  ;;  %v198_v36 = vsel %vm151_vm1, %v137_v18, 0.0 }
  0xa2   :  { %154 = vst.msk [vmem:[%s471_s3 + $0x10] sm:$0xff] %vm151_vm1, %v137_v18 }
  0xa3   :  { %v224_v35 = vsel %vm151_vm1, %v216_v26, 0.0  ;;  %v227_v42 = vsel %vm151_vm1, %v218_v31, 0.0 }
  0xa5   :  { %v141_v21 = vpop.f32.mrf.mxu2  ;;  %v146_v22 = vpop.f32.mrf.mxu3 }
  0xa6   :  { %v142_v23 = vadd.f32 %v344_v13, %v141_v21  ;;  %v133_v24 = vpop.f32.mrf.mxu0  ;;  %v138_v25 = vpop.f32.mrf.mxu1  ;;  %v147_v29 = vadd.f32 %v344_v13, %v146_v22 }
  0xa7   :  { %v134_v27 = vadd.f32 %v344_v13, %v133_v24  ;;  %v139_v28 = vadd.f32 %v344_v13, %v138_v25 }
  0xa8   :  { %156 = vst.msk [vmem:[%s471_s3 + $0x20] sm:$0xff] %vm151_vm1, %v142_v23  ;;  %v193_v41 = vsel %vm185_vm2, %v147_v29, 0.0  ;;  %v220_v43 = vmul.f32 %v142_v23, %v142_v23  ;;  %v202_v51 = vsel %vm151_vm1, %v142_v23, 0.0 }
  0xa9   :  { %153 = vst.msk [vmem:[%s471_s3 + $0x8] sm:$0xff] %vm151_vm1, %v134_v27  ;;  %v196_v32 = vsel %vm151_vm1, %v134_v27, 0.0  ;;  %v217_v33 = vmul.f32 %v134_v27, %v134_v27  ;;  %v219_v38 = vmul.f32 %v139_v28, %v139_v28  ;;  %v200_v44 = vsel %vm151_vm1, %v139_v28, 0.0 }
  0xaa   :  { %v197_v34 = vadd.f32 %v196_v32, %v195_v30  ;;  %155 = vst.msk [vmem:[%s471_s3 + $0x18] sm:$0xff] %vm151_vm1, %v139_v28  ;;  %v222_v53 = vmul.f32 %v193_v41, %v193_v41  ;;  %v231_v57 = vsel %vm151_vm1, %v220_v43, 0.0  ;;  %v206_v58 = vsel %vm151_vm1, %v193_v41, 0.0 }
  0xab   :  { %v225_v37 = vsel %vm151_vm1, %v217_v33, 0.0  ;;  %158 = vst.msk [vmem:[%s471_s3 + $0x30] sm:$0xff] %vm151_vm1, %v147_v29  ;;  %v229_v52 = vsel %vm151_vm1, %v219_v38, 0.0 }
  0xac   :  { %v226_v39 = vadd.f32 %v225_v37, %v224_v35  ;;  %v199_v40 = vadd.f32 %v198_v36, %v197_v34  ;;  %v235_v62 = vsel %vm151_vm1, %v222_v53, 0.0 }
  0xad   :  { %v143_v45 = vpop.f32.mrf.mxu2  ;;  %v148_v46 = vpop.f32.mrf.mxu3 }
  0xae   :  { %v201_v47 = vadd.f32 %v200_v44, %v199_v40  ;;  %v228_v48 = vadd.f32 %v227_v42, %v226_v39  ;;  %v144_v49 = vadd.f32 %v344_v13, %v143_v45  ;;  %v149_v50 = vadd.f32 %v344_v13, %v148_v46 }
  0xb0   :  { %v230_v54 = vadd.f32 %v229_v52, %v228_v48  ;;  %157 = vst.msk [vmem:[%s471_s3 + $0x28] sm:$0xff] %vm151_vm1, %v144_v49  ;;  %v203_v55 = vadd.f32 %v202_v51, %v201_v47  ;;  %v221_v56 = vmul.f32 %v144_v49, %v144_v49  ;;  %v204_v59 = vsel %vm151_vm1, %v144_v49, 0.0 }
  0xb1   :  { %159 = vst.msk [vmem:[%s471_s3 + $0x38] sm:$0xff] %vm151_vm1, %v149_v50 }
  0xb2   :  { %v205_v60 = vadd.f32 %v204_v59, %v203_v55  ;;  %v232_v61 = vadd.f32 %v231_v57, %v230_v54  ;;  %v233_v63 = vsel %vm151_vm1, %v221_v56, 0.0 }
  0xb4   :  { %v207_v0 = vadd.f32 %v206_v58, %v205_v60  ;;  %v234_v1 = vadd.f32 %v233_v63, %v232_v61 }
  0xb6   :  { %v210_v2 = vrot.slane %v207_v0, 4  ;;  %v236_v3 = vadd.f32 %v235_v62, %v234_v1 }
  0xb8   :  { %v211_v4 = vadd.f32 %v210_v2, %v207_v0  ;;  %v239_v5 = vrot.slane %v236_v3, 4 }
  0xba   :  { %v212_v6 = vrot.slane %v211_v4, 2  ;;  %v240_v7 = vadd.f32 %v239_v5, %v236_v3 }
  0xbc   :  { %v213_v8 = vadd.f32 %v212_v6, %v211_v4  ;;  %v241_v9 = vrot.slane %v240_v7, 2 }
  0xbe   :  { %v214_v10 = vrot.slane %v213_v8, 1  ;;  %v242_v11 = vadd.f32 %v241_v9, %v240_v7 }
  0xc0   :  { %v243_v12 = vrot.slane %v242_v11, 1  ;;  %v215_v13 = vadd.f32 %v214_v10, %v213_v8 }
  0xc2   :  { %v244_v14 = vadd.f32 %v243_v12, %v242_v11 }
  0xc4   :  { %v247_v16 = vsel %vm246_vm3, %v215_v13, %v244_v14 }
  0xc5   :  { %v248_v17 = vadd.f32 %v247_v16, %v245_v15 }
  0xc7   :  { %250 = vst.msk [vmem:[%s470_s4] sm:$0x3] %vm20_vm0, %v248_v17 }

// kernel: discriminator_forward.10
= control target key start
LH: loop header
LB: loop body
LE: loop exit
PB: predicated region body
PF: predicated region fallthrough
CT: control target
= control target key end

     0   :  { %vm63_vm3 = vcmask 261120   ;;  %s134_s1 = inlined_call_operand.vmem [shape: f32[2,32], index: 1, kind: input, shape index: {}]   ;;  %s135_s2 = inlined_call_operand.vmem [shape: f32[2,32], index: 2, kind: input, shape index: {}]   ;;  %s136_s0 = inlined_call_operand.vmem [shape: f32[32,32], index: 0, kind: input, shape index: {}]   ;;  %s137_s3 = inlined_call_operand.vmem [shape: f32[32,32], index: 3, kind: output, shape index: {}]  }
   0x1   :  { %v14_v0 = vld [vmem:[%s134_s1] sm:$0x1]  ;;  %v16_v1 = vld [vmem:[%s134_s1 + $0x1] sm:$0x1]  ;;  %v38_v19 = vld [vmem:[%s136_s0 + $0x8] sm:$0xff] }
   0x2   :  { %v15_v2 = vmul.f32 0.055555556, %v14_v0  ;;  %v17_v3 = vmul.f32 0.055555556, %v16_v1  ;;  %v32_v14 = vld [vmem:[%s135_s2] sm:$0x1] }
   0x3   :  { %v34_v17 = vld [vmem:[%s135_s2 + $0x1] sm:$0x1]  ;;  %v39_v20 = vld [vmem:[%s136_s0 + $0x10] sm:$0xff]  ;;  %v40_v23 = vld [vmem:[%s136_s0 + $0x18] sm:$0xff] }
   0x4   :  { %v18_v4 = vmul.f32 %v15_v2, %v15_v2  ;;  %v37_v18 = vld [vmem:[%s136_s0] sm:$0xff] }
   0x6   :  { %v19_v5 = vsub.f32 %v17_v3, %v18_v4 }
   0x8   :  { %v20_v6 = vmax.f32 %v19_v5, 0.0 }
   0xa   :  { %v21_v7 = vadd.f32 1e-05, %v20_v6 }
   0xc   :  { %72 = vrsqrt.f32 %v21_v7  ;;  %vm28_vm0 = vweird.f32 %v21_v7 }
  0x12   :  { %v73_v8 = vpop.eup %72 }
  0x13   :  { %v23_v9 = vmul.f32 %v73_v8, %v21_v7  ;;  %vm29_vm1 = vweird.f32 %v73_v8 }
  0x14   :  { %vm30_vm2 = vmor %vm28_vm0, %vm29_vm1 }
  0x15   :  { %v24_v10 = vmul.f32 %v73_v8, %v23_v9 }
  0x17   :  { %v25_v11 = vmul.f32 0.5, %v24_v10 }
  0x19   :  { %v26_v12 = vsub.f32 1.5, %v25_v11 }
  0x1b   :  { %v27_v13 = vmul.f32 %v73_v8, %v26_v12 }
  0x1d   :  { %v31_v15 = vsel %vm30_vm2, %v73_v8, %v27_v13 }
  0x1e   :  { %v33_v16 = vmul.f32 %v32_v14, %v31_v15 }
  0x20   :  { %v35_v21 = vmul.f32 %v33_v16, %v15_v2  ;;  %v41_v22 = vperm.slane %v33_v16, 0 }
  0x22   :  { %v36_v24 = vsub.f32 %v34_v17, %v35_v21  ;;  %v42_v25 = vmul.f32 %v41_v22, %v37_v18  ;;  %v43_v26 = vmul.f32 %v41_v22, %v38_v19  ;;  %v44_v27 = vmul.f32 %v41_v22, %v39_v20 }
  0x23   :  { %v45_v28 = vmul.f32 %v41_v22, %v40_v23 }
  0x24   :  { %v46_v29 = vperm.slane %v36_v24, 0 }
  0x26   :  { %v47_v30 = vadd.f32 %v46_v29, %v42_v25  ;;  %v48_v31 = vadd.f32 %v46_v29, %v43_v26  ;;  %v49_v32 = vadd.f32 %v46_v29, %v44_v27  ;;  %v50_v33 = vadd.f32 %v46_v29, %v45_v28 }
  0x28   :  { %vm51_vm4 = vcmp.ge.f32.partialorder %v47_v30, 0.0  ;;  %v55_v34 = vmul.f32 0.2, %v47_v30  ;;  %vm52_vm5 = vcmp.ge.f32.partialorder %v48_v31, 0.0  ;;  %v56_v35 = vmul.f32 0.2, %v48_v31 }
  0x29   :  { %vm53_vm6 = vcmp.ge.f32.partialorder %v49_v32, 0.0  ;;  %v57_v36 = vmul.f32 0.2, %v49_v32  ;;  %vm54_vm7 = vcmp.ge.f32.partialorder %v50_v33, 0.0  ;;  %v58_v37 = vmul.f32 0.2, %v50_v33 }
  0x2a   :  { %v59_v38 = vsel %vm51_vm4, %v47_v30, %v55_v34  ;;  %v60_v39 = vsel %vm52_vm5, %v48_v31, %v56_v35 }
  0x2b   :  { %64 = vst.msk [vmem:[%s137_s3] sm:$0xff] %vm63_vm3, %v59_v38  ;;  %v61_v40 = vsel %vm53_vm6, %v49_v32, %v57_v36  ;;  %v62_v41 = vsel %vm54_vm7, %v50_v33, %v58_v37 }
  0x2c   :  { %65 = vst.msk [vmem:[%s137_s3 + $0x8] sm:$0xff] %vm63_vm3, %v60_v39 }
  0x2d   :  { %66 = vst.msk [vmem:[%s137_s3 + $0x10] sm:$0xff] %vm63_vm3, %v61_v40 }
  0x2e   :  { %67 = vst.msk [vmem:[%s137_s3 + $0x18] sm:$0xff] %vm63_vm3, %v62_v41 }

// kernel: discriminator_forward.9
= control target key start
LH: loop header
LB: loop body
LE: loop exit
PB: predicated region body
PF: predicated region fallthrough
CT: control target
= control target key end

     0   :  { %vm20_vm0 = vcmask 254976   ;;  %v402_v28 = vmov 0.0   ;;  %v222_v29 = vlaneseq  ;;  %vm216_vm1 = vcmask 261120   ;;  %s536_s1 = inlined_call_operand.vmem [shape: bf16[256,32], index: 1, kind: input, shape index: {}]   ;;  %s537_s2 = inlined_call_operand.vmem [shape: f32[1,32], index: 2, kind: input, shape index: {}]   ;;  %s538_s0 = inlined_call_operand.vmem [shape: bf16[32,256], index: 0, kind: input, shape index: {}]   ;;  %s539_s4 = inlined_call_operand.vmem [shape: f32[2,32], index: 4, kind: output, shape index: {1}]   ;;  %s540_s3 = inlined_call_operand.vmem [shape: f32[32,32], index: 3, kind: output, shape index: {0}]  }
   0x1   :  { %v375_v0 = vld [vmem:[%s536_s1 + $0x38] sm:$0xff]  ;;  %v374_v2 = vld [vmem:[%s536_s1 + $0x30] sm:$0xff]  ;;  %v373_v4 = vld [vmem:[%s536_s1 + $0x28] sm:$0xff]  ;;  %21 = vst.msk [vmem:[%s539_s4] sm:$0x3] %vm20_vm0, %v402_v28  ;;  %vm271_vm3 = vcmask 1040384  }
   0x2   :  { %v383_v1 = vld [vmem:[%s536_s1 + $0x78] sm:$0xff]  ;;  %178 = vmatpush.bf16.msra.mxu0 %v375_v0  ;;  %384 = vmatpush.bf16.msra.mxu2 %v375_v0  ;;  %v382_v3 = vld [vmem:[%s536_s1 + $0x70] sm:$0xff]  ;;  %v381_v5 = vld [vmem:[%s536_s1 + $0x68] sm:$0xff]  ;;  %v223_v32 = vshrl.u32 %v222_v29, 7 }
   0x3   :  { %197 = vmatpush.bf16.msra.mxu1 %v383_v1  ;;  %392 = vmatpush.bf16.msra.mxu3 %v383_v1  ;;  %v372_v6 = vld [vmem:[%s536_s1 + $0x20] sm:$0xff]  ;;  %v371_v8 = vld [vmem:[%s536_s1 + $0x18] sm:$0xff]  ;;  %v370_v10 = vld [vmem:[%s536_s1 + $0x10] sm:$0xff] }
   0x4   :  { %v380_v7 = vld [vmem:[%s536_s1 + $0x60] sm:$0xff]  ;;  %v379_v9 = vld [vmem:[%s536_s1 + $0x58] sm:$0xff]  ;;  %v378_v11 = vld [vmem:[%s536_s1 + $0x50] sm:$0xff]  ;;  %v225_v36 = vadd.s32 16, %v223_v32 }
   0x5   :  { %v369_v12 = vld [vmem:[%s536_s1 + $0x8] sm:$0xff]  ;;  %v368_v14 = vld [vmem:[%s536_s1] sm:$0xff]  ;;  %v294_v18 = vld [vmem:[%s538_s0 + $0x10] sm:$0xf] }
   0x6   :  { %179 = vmatpush.bf16.msra.mxu0 %v374_v2  ;;  %385 = vmatpush.bf16.msra.mxu2 %v374_v2  ;;  %v377_v13 = vld [vmem:[%s536_s1 + $0x48] sm:$0xff]  ;;  %v376_v15 = vld [vmem:[%s536_s1 + $0x40] sm:$0xff]  ;;  %v367_v19 = vld [vmem:[%s538_s0 + $0x14] sm:$0xf0]  ;;  %vm234_vm2 = vcmp.lt.s32.totalorder %v225_v36, 18 }
   0x7   :  { %198 = vmatpush.bf16.msra.mxu1 %v382_v3  ;;  %393 = vmatpush.bf16.msra.mxu3 %v382_v3  ;;  %v286_v16 = vld [vmem:[%s538_s0] sm:$0xf]  ;;  %v365_v17 = vld [vmem:[%s538_s0 + $0x4] sm:$0xf0]  ;;  %v364_v20 = vld [vmem:[%s538_s0 + $0x4] sm:$0xf]  ;;  %v295_v25 = vor.u32 %v367_v19, %v294_v18 }
   0x8   :  { %v288_v21 = vld [vmem:[%s538_s0 + $0x8] sm:$0xf0]  ;;  %v366_v22 = vld [vmem:[%s538_s0 + $0x14] sm:$0xf]  ;;  %v296_v23 = vld [vmem:[%s538_s0 + $0x18] sm:$0xf0]  ;;  %v287_v24 = vor.u32 %v365_v17, %v286_v16 }
   0x9   :  { %v291_v26 = vor.u32 %v364_v20, %v288_v21  ;;  %v299_v27 = vor.u32 %v366_v22, %v296_v23  ;;  %v401_v30 = vld [vmem:[%s537_s2] ss:$0 sm:$0xff] }
   0xa   :  { %180 = vmatpush.bf16.msra.mxu0 %v373_v4  ;;  %386 = vmatpush.bf16.msra.mxu2 %v373_v4 }
   0xb   :  { %199 = vmatpush.bf16.msra.mxu1 %v381_v5  ;;  %394 = vmatpush.bf16.msra.mxu3 %v381_v5 }
   0xe   :  { %181 = vmatpush.bf16.msra.mxu0 %v372_v6  ;;  %387 = vmatpush.bf16.msra.mxu2 %v372_v6 }
   0xf   :  { %200 = vmatpush.bf16.msra.mxu1 %v380_v7  ;;  %395 = vmatpush.bf16.msra.mxu3 %v380_v7 }
  0x12   :  { %182 = vmatpush.bf16.msra.mxu0 %v371_v8  ;;  %388 = vmatpush.bf16.msra.mxu2 %v371_v8 }
  0x13   :  { %201 = vmatpush.bf16.msra.mxu1 %v379_v9  ;;  %396 = vmatpush.bf16.msra.mxu3 %v379_v9 }
  0x16   :  { %183 = vmatpush.bf16.msra.mxu0 %v370_v10  ;;  %389 = vmatpush.bf16.msra.mxu2 %v370_v10 }
  0x17   :  { %202 = vmatpush.bf16.msra.mxu1 %v378_v11  ;;  %397 = vmatpush.bf16.msra.mxu3 %v378_v11  ;;  %v270_v11 = vld [vmem:[%s539_s4] sm:$0x3] }
  0x1a   :  { %184 = vmatpush.bf16.msra.mxu0 %v369_v12  ;;  %390 = vmatpush.bf16.msra.mxu2 %v369_v12 }
  0x1b   :  { %203 = vmatpush.bf16.msra.mxu1 %v377_v13  ;;  %398 = vmatpush.bf16.msra.mxu3 %v377_v13 }
  0x1e   :  { %185 = vmatpush.bf16.msra.mxu0 %v368_v14  ;;  %391 = vmatpush.bf16.msra.mxu2 %v368_v14 }
  0x1f   :  { %204 = vmatpush.bf16.msra.mxu1 %v376_v15  ;;  %399 = vmatpush.bf16.msra.mxu3 %v376_v15 }
  0x21   :  { %186 = vmatmul.bf16.vlgmr.msra.gmra.mxu0 %v287_v24  ;;  %191 = vmatmul.bf16.vlgmr.msra.gmra.mxu2 %v295_v25 }
  0x22   :  { %205 = vmatmul.bf16.vlgmr.msra.gmra.mxu1 %v291_v26  ;;  %210 = vmatmul.bf16.vlgmr.msra.gmra.mxu3 %v299_v27 }
  0x9e   :  { %v187_v31 = vpop.f32.mrf.mxu0 }
  0x9f   :  { %v188_v33 = vadd.f32 %v401_v30, %v187_v31  ;;  %v206_v34 = vpop.f32.mrf.mxu1 }
  0xa1   :  { %v207_v35 = vadd.f32 %v206_v34, %v188_v33 }
  0xa3   :  { %217 = vst.msk [vmem:[%s540_s3] sm:$0xff] %vm216_vm1, %v207_v35  ;;  %v253_v44 = vmul.f32 %v207_v35, %v207_v35  ;;  %v240_v48 = vsel %vm216_vm1, %v207_v35, 0.0 }
  0xa4   :  { %v192_v37 = vpop.f32.mrf.mxu2 }
  0xa5   :  { %v193_v38 = vadd.f32 %v401_v30, %v192_v37  ;;  %v211_v39 = vpop.f32.mrf.mxu3  ;;  %v257_v54 = vsel %vm216_vm1, %v253_v44, 0.0 }
  0xa6   :  { %v189_v40 = vpop.f32.mrf.mxu0 }
  0xa7   :  { %v212_v41 = vadd.f32 %v211_v39, %v193_v38  ;;  %v190_v42 = vadd.f32 %v401_v30, %v189_v40  ;;  %v208_v43 = vpop.f32.mrf.mxu1 }
  0xa9   :  { %219 = vst.msk [vmem:[%s540_s3 + $0x10] sm:$0xff] %vm216_vm1, %v212_v41  ;;  %v238_v45 = vsel %vm234_vm2, %v212_v41, 0.0  ;;  %v209_v46 = vadd.f32 %v208_v43, %v190_v42 }
  0xaa   :  { %v255_v47 = vmul.f32 %v238_v45, %v238_v45  ;;  %v243_v49 = vsel %vm216_vm1, %v238_v45, 0.0 }
  0xab   :  { %218 = vst.msk [vmem:[%s540_s3 + $0x8] sm:$0xff] %vm216_vm1, %v209_v46  ;;  %v241_v50 = vsel %vm216_vm1, %v209_v46, 0.0  ;;  %v254_v51 = vmul.f32 %v209_v46, %v209_v46 }
  0xac   :  { %v242_v52 = vadd.f32 %v241_v50, %v240_v48  ;;  %v194_v53 = vpop.f32.mrf.mxu2  ;;  %v260_v55 = vsel %vm216_vm1, %v255_v47, 0.0 }
  0xad   :  { %v258_v56 = vsel %vm216_vm1, %v254_v51, 0.0  ;;  %v195_v57 = vadd.f32 %v401_v30, %v194_v53  ;;  %v213_v60 = vpop.f32.mrf.mxu3 }
  0xae   :  { %v244_v58 = vadd.f32 %v243_v49, %v242_v52  ;;  %v259_v59 = vadd.f32 %v258_v56, %v257_v54 }
  0xaf   :  { %v214_v61 = vadd.f32 %v213_v60, %v195_v57 }
  0xb0   :  { %v247_v62 = vrot.slane %v244_v58, 4  ;;  %v261_v63 = vadd.f32 %v260_v55, %v259_v59 }
  0xb1   :  { %220 = vst.msk [vmem:[%s540_s3 + $0x18] sm:$0xff] %vm216_vm1, %v214_v61 }
  0xb2   :  { %v248_v0 = vadd.f32 %v247_v62, %v244_v58  ;;  %v264_v1 = vrot.slane %v261_v63, 4 }
  0xb4   :  { %v249_v2 = vrot.slane %v248_v0, 2  ;;  %v265_v3 = vadd.f32 %v264_v1, %v261_v63 }
  0xb6   :  { %v250_v4 = vadd.f32 %v249_v2, %v248_v0  ;;  %v266_v5 = vrot.slane %v265_v3, 2 }
  0xb8   :  { %v251_v6 = vrot.slane %v250_v4, 1  ;;  %v267_v7 = vadd.f32 %v266_v5, %v265_v3 }
  0xba   :  { %v268_v8 = vrot.slane %v267_v7, 1  ;;  %v252_v9 = vadd.f32 %v251_v6, %v250_v4 }
  0xbc   :  { %v269_v10 = vadd.f32 %v268_v8, %v267_v7 }
  0xbe   :  { %v272_v12 = vsel %vm271_vm3, %v252_v9, %v269_v10 }
  0xbf   :  { %v273_v13 = vadd.f32 %v272_v12, %v270_v11 }
  0xc1   :  { %275 = vst.msk [vmem:[%s539_s4] sm:$0x3] %vm20_vm0, %v273_v13 }

// kernel: discriminator_forward.11
= control target key start
LH: loop header
LB: loop body
LE: loop exit
PB: predicated region body
PF: predicated region fallthrough
CT: control target
= control target key end

     0   :  { %vm366_vm0 = vcmask 7168   ;;  %s711_s1 = inlined_call_operand.vmem [shape: bf16[512,1], index: 1, kind: input, shape index: {}]   ;;  %s712_s2 = inlined_call_operand.<no memory space> [shape: f32[1,1], index: 2, kind: input, shape index: {}]   ;;  %s713_s0 = inlined_call_operand.vmem [shape: bf16[16,512], index: 0, kind: input, shape index: {}]   ;;  %s714_s3 = inlined_call_operand.vmem [shape: f32[16,1], index: 3, kind: output, shape index: {}]  }
   0x1   :  { %v528_v0 = vld [vmem:[%s711_s1 + $0x38] sm:$0xff]  ;;  %v527_v4 = vld [vmem:[%s711_s1 + $0x30] sm:$0xff]  ;;  %v8_v6 = vstv %s712_s2  ;;  %v526_v9 = vld [vmem:[%s711_s1 + $0x28] sm:$0xff] }
   0x2   :  { %v536_v1 = vld [vmem:[%s711_s1 + $0x78] sm:$0xff]  ;;  %300 = vmatpush.bf16.msra.mxu0 %v528_v0  ;;  %v535_v5 = vld [vmem:[%s711_s1 + $0x70] sm:$0xff]  ;;  %9 = vst [vmem:[#allocation2] sm:$0x1] %v8_v6  ;;  %v534_v10 = vld [vmem:[%s711_s1 + $0x68] sm:$0xff] }
   0x3   :  { %v544_v2 = vld [vmem:[%s711_s1 + $0xb8] sm:$0xff]  ;;  %314 = vmatpush.bf16.msra.mxu1 %v536_v1  ;;  %v543_v7 = vld [vmem:[%s711_s1 + $0xb0] sm:$0xff]  ;;  %v542_v11 = vld [vmem:[%s711_s1 + $0xa8] sm:$0xff] }
   0x4   :  { %v552_v3 = vld [vmem:[%s711_s1 + $0xf8] sm:$0xff]  ;;  %328 = vmatpush.bf16.msra.mxu2 %v544_v2  ;;  %v551_v8 = vld [vmem:[%s711_s1 + $0xf0] sm:$0xff]  ;;  %v550_v12 = vld [vmem:[%s711_s1 + $0xe8] sm:$0xff] }
   0x5   :  { %342 = vmatpush.bf16.msra.mxu3 %v552_v3  ;;  %v525_v13 = vld [vmem:[%s711_s1 + $0x20] sm:$0xff]  ;;  %v524_v17 = vld [vmem:[%s711_s1 + $0x18] sm:$0xff]  ;;  %v523_v21 = vld [vmem:[%s711_s1 + $0x10] sm:$0xff] }
   0x6   :  { %301 = vmatpush.bf16.msra.mxu0 %v527_v4  ;;  %v533_v14 = vld [vmem:[%s711_s1 + $0x60] sm:$0xff]  ;;  %v532_v18 = vld [vmem:[%s711_s1 + $0x58] sm:$0xff]  ;;  %v531_v22 = vld [vmem:[%s711_s1 + $0x50] sm:$0xff] }
   0x7   :  { %315 = vmatpush.bf16.msra.mxu1 %v535_v5  ;;  %v541_v15 = vld [vmem:[%s711_s1 + $0xa0] sm:$0xff]  ;;  %v540_v19 = vld [vmem:[%s711_s1 + $0x98] sm:$0xff]  ;;  %v539_v23 = vld [vmem:[%s711_s1 + $0x90] sm:$0xff] }
   0x8   :  { %329 = vmatpush.bf16.msra.mxu2 %v543_v7  ;;  %v549_v16 = vld [vmem:[%s711_s1 + $0xe0] sm:$0xff]  ;;  %v548_v20 = vld [vmem:[%s711_s1 + $0xd8] sm:$0xff]  ;;  %v547_v24 = vld [vmem:[%s711_s1 + $0xd0] sm:$0xff] }
   0x9   :  { %343 = vmatpush.bf16.msra.mxu3 %v551_v8  ;;  %v522_v25 = vld [vmem:[%s711_s1 + $0x8] sm:$0xff]  ;;  %v521_v29 = vld [vmem:[%s711_s1] sm:$0xff]  ;;  %v519_v34 = vld [vmem:[%s713_s0 + $0xc] sm:$0xf0] }
   0xa   :  { %302 = vmatpush.bf16.msra.mxu0 %v526_v9  ;;  %v530_v26 = vld [vmem:[%s711_s1 + $0x48] sm:$0xff]  ;;  %v529_v30 = vld [vmem:[%s711_s1 + $0x40] sm:$0xff]  ;;  %v377_v36 = vld [vmem:[%s713_s0 + $0x10] sm:$0xf0] }
   0xb   :  { %316 = vmatpush.bf16.msra.mxu1 %v534_v10  ;;  %v538_v27 = vld [vmem:[%s711_s1 + $0x88] sm:$0xff]  ;;  %v537_v31 = vld [vmem:[%s711_s1 + $0x80] sm:$0xff]  ;;  %v520_v38 = vld [vmem:[%s713_s0 + $0x14] sm:$0xf0] }
   0xc   :  { %330 = vmatpush.bf16.msra.mxu2 %v542_v11  ;;  %v546_v28 = vld [vmem:[%s711_s1 + $0xc8] sm:$0xff]  ;;  %v545_v32 = vld [vmem:[%s711_s1 + $0xc0] sm:$0xff]  ;;  %v385_v40 = vld [vmem:[%s713_s0 + $0x18] sm:$0xf0] }
   0xd   :  { %344 = vmatpush.bf16.msra.mxu3 %v550_v12  ;;  %v375_v33 = vld [vmem:[%s713_s0] sm:$0xf]  ;;  %v517_v35 = vld [vmem:[%s713_s0 + $0x4] sm:$0xf]  ;;  %v383_v37 = vld [vmem:[%s713_s0 + $0x8] sm:$0xf] }
   0xe   :  { %303 = vmatpush.bf16.msra.mxu0 %v525_v13  ;;  %v518_v39 = vld [vmem:[%s713_s0 + $0xc] sm:$0xf]  ;;  %v376_v41 = vor.u32 %v519_v34, %v375_v33  ;;  %v380_v42 = vor.u32 %v517_v35, %v377_v36  ;;  %v384_v43 = vor.u32 %v520_v38, %v383_v37  ;;  %v553_v45 = vld [vmem:[#allocation2] ss:$0 sm:$0xff] }
   0xf   :  { %317 = vmatpush.bf16.msra.mxu1 %v533_v14  ;;  %v388_v44 = vor.u32 %v518_v39, %v385_v40 }
  0x10   :  { %331 = vmatpush.bf16.msra.mxu2 %v541_v15 }
  0x11   :  { %345 = vmatpush.bf16.msra.mxu3 %v549_v16 }
  0x12   :  { %304 = vmatpush.bf16.msra.mxu0 %v524_v17 }
  0x13   :  { %318 = vmatpush.bf16.msra.mxu1 %v532_v18 }
  0x14   :  { %332 = vmatpush.bf16.msra.mxu2 %v540_v19 }
  0x15   :  { %346 = vmatpush.bf16.msra.mxu3 %v548_v20 }
  0x16   :  { %305 = vmatpush.bf16.msra.mxu0 %v523_v21 }
  0x17   :  { %319 = vmatpush.bf16.msra.mxu1 %v531_v22 }
  0x18   :  { %333 = vmatpush.bf16.msra.mxu2 %v539_v23 }
  0x19   :  { %347 = vmatpush.bf16.msra.mxu3 %v547_v24 }
  0x1a   :  { %306 = vmatpush.bf16.msra.mxu0 %v522_v25 }
  0x1b   :  { %320 = vmatpush.bf16.msra.mxu1 %v530_v26 }
  0x1c   :  { %334 = vmatpush.bf16.msra.mxu2 %v538_v27 }
  0x1d   :  { %348 = vmatpush.bf16.msra.mxu3 %v546_v28 }
  0x1e   :  { %307 = vmatpush.bf16.msra.mxu0 %v521_v29 }
  0x1f   :  { %321 = vmatpush.bf16.msra.mxu1 %v529_v30 }
  0x20   :  { %335 = vmatpush.bf16.msra.mxu2 %v537_v31 }
  0x21   :  { %349 = vmatpush.bf16.msra.mxu3 %v545_v32  ;;  %308 = vmatmul.bf16.vlgmr.msra.gmra.mxu0 %v376_v41 }
  0x22   :  { %322 = vmatmul.bf16.vlgmr.msra.gmra.mxu1 %v380_v42 }
  0x23   :  { %336 = vmatmul.bf16.vlgmr.msra.gmra.mxu2 %v384_v43 }
  0x24   :  { %350 = vmatmul.bf16.vlgmr.msra.gmra.mxu3 %v388_v44 }
  0x9e   :  { %v309_v46 = vpop.f32.mrf.mxu0 }
  0x9f   :  { %v310_v47 = vadd.f32 %v553_v45, %v309_v46  ;;  %v323_v48 = vpop.f32.mrf.mxu1 }
  0xa1   :  { %v324_v49 = vadd.f32 %v323_v48, %v310_v47 }
  0xa6   :  { %v337_v50 = vpop.f32.mrf.mxu2  ;;  %v311_v53 = vpop.f32.mrf.mxu0 }
  0xa7   :  { %v351_v51 = vpop.f32.mrf.mxu3  ;;  %v338_v52 = vadd.f32 %v337_v50, %v324_v49  ;;  %v312_v55 = vadd.f32 %v553_v45, %v311_v53  ;;  %v325_v57 = vpop.f32.mrf.mxu1 }
  0xa9   :  { %v352_v54 = vadd.f32 %v351_v51, %v338_v52  ;;  %v326_v59 = vadd.f32 %v325_v57, %v312_v55 }
  0xab   :  { %v356_v56 = vsub.f32 0.0, %v352_v54 }
  0xad   :  { %v358_v58 = vmul.f32 1.442695, %v356_v56 }
  0xae   :  { %v339_v60 = vpop.f32.mrf.mxu2 }
  0xaf   :  { %554 = vpow2.f32 %v358_v58  ;;  %v340_v61 = vadd.f32 %v339_v60, %v326_v59  ;;  %v353_v62 = vpop.f32.mrf.mxu3 }
  0xb1   :  { %v354_v63 = vadd.f32 %v353_v62, %v340_v61 }
  0xb3   :  { %v357_v0 = vsub.f32 0.0, %v354_v63 }
  0xb5   :  { %v555_v1 = vpop.eup %554  ;;  %v360_v2 = vmul.f32 1.442695, %v357_v0 }
  0xb6   :  { %v362_v3 = vadd.f32 1.0, %v555_v1 }
  0xb7   :  { %556 = vpow2.f32 %v360_v2 }
  0xb8   :  { %558 = vrcp.f32 %v362_v3 }
  0xbd   :  { %v557_v4 = vpop.eup %556 }
  0xbe   :  { %v559_v5 = vpop.eup %558  ;;  %v363_v6 = vadd.f32 1.0, %v557_v4 }
  0xbf   :  { %367 = vst.msk [vmem:[%s714_s3] sm:$0xff] %vm366_vm0, %v559_v5 }
  0xc0   :  { %560 = vrcp.f32 %v363_v6 }
  0xc6   :  { %v561_v7 = vpop.eup %560 }
  0xc7   :  { %368 = vst.msk [vmem:[%s714_s3 + $0x8] sm:$0xff] %vm366_vm0, %v561_v7 }

</bundles_post_ra>
